<compile_context>
chip_gen: v7x
topology: tpu7x:2x2x1
jax: 0.10.0
libtpu: 0.0.40
codegen_flags: <defaults>
</compile_context>

<pallas_src>
import functools
import math

import jax
import jax.numpy as jnp
from jax.experimental import pallas as pl
from jax.experimental.pallas import tpu as pltpu


# --------------------------------------------------------------------------- #
# Kernel                                                                      #
# --------------------------------------------------------------------------- #
def _mha_kernel(x_ref, wq_ref, wk_ref, wv_ref, wo_ref, o_ref, *,
                num_heads, head_qk, head_v, scale, kv_tile):
    b_blk, seq, dim_e = x_ref.shape
    dim_k = wq_ref.shape[1]
    dim_v = wv_ref.shape[1]
    dim_o = wo_ref.shape[1]
    cdt = x_ref.dtype                       # MXU input dtype (f32 or bf16)

    # ---- fused QKV projections: (batch block, seq) folded into M so the MXU
    # sees b_blk*seq rows per push; f32 accumulation; q pre-scaled.
    x2 = x_ref[...].reshape(b_blk * seq, dim_e)
    q = jnp.dot(x2, wq_ref[...], preferred_element_type=jnp.float32) * scale
    k = jnp.dot(x2, wk_ref[...], preferred_element_type=jnp.float32)
    v = jnp.dot(x2, wv_ref[...], preferred_element_type=jnp.float32)
    q = q.astype(cdt).reshape(b_blk, seq, dim_k)
    k = k.astype(cdt).reshape(b_blk, seq, dim_k)
    v = v.astype(cdt).reshape(b_blk, seq, dim_v)

    n_kv = seq // kv_tile

    # ---- per-head attention with flash-style online softmax over KV tiles.
    # Head slices are fed straight into dot_general (no q/k/v concat copies);
    # the f32 score working set is (b_blk, seq, kv_tile) instead of (H*b, S, S).
    # TODO(synk): for very large seq // kv_tile, switch the static unroll to a
    # lax.fori_loop carrying (m, l, acc) to bound code size / live ranges.
    av_heads = []
    for h in range(num_heads):
        qh = q[:, :, h * head_qk:(h + 1) * head_qk]
        kh = k[:, :, h * head_qk:(h + 1) * head_qk]
        vh = v[:, :, h * head_v:(h + 1) * head_v]

        m_i = l_i = acc = None
        for t in range(n_kv):
            kt = kh[:, t * kv_tile:(t + 1) * kv_tile, :]
            vt = vh[:, t * kv_tile:(t + 1) * kv_tile, :]
            # contraction over head_qk folded into dot_general (no kt.T)
            s = jnp.einsum("bqd,bkd->bqk", qh, kt,
                           preferred_element_type=jnp.float32)
            m_t = jnp.max(s, axis=-1, keepdims=True)
            if t == 0:
                m_i = m_t
                e = jnp.exp(s - m_i)
                l_i = jnp.sum(e, axis=-1, keepdims=True)
                acc = jnp.einsum("bqk,bkd->bqd", e.astype(cdt), vt,
                                 preferred_element_type=jnp.float32)
            else:
                m_new = jnp.maximum(m_i, m_t)
                alpha = jnp.exp(m_i - m_new)
                e = jnp.exp(s - m_new)
                l_i = alpha * l_i + jnp.sum(e, axis=-1, keepdims=True)
                acc = alpha * acc + jnp.einsum(
                    "bqk,bkd->bqd", e.astype(cdt), vt,
                    preferred_element_type=jnp.float32)
                m_i = m_new

        # softmax denominator: EUP approximate reciprocal + one Newton step.
        inv = pl.reciprocal(l_i, approx=True)
        inv = inv * (2.0 - l_i * inv)
        av_heads.append((acc * inv).astype(cdt))

    # ---- merge heads (single lane-axis concat; head h occupies feature
    # columns [h*head_v, (h+1)*head_v), matching torch's transpose+view) and
    # run the output projection straight from registers.
    merged = jnp.concatenate(av_heads, axis=-1).reshape(b_blk * seq, dim_v)
    out = jnp.dot(merged, wo_ref[...], preferred_element_type=jnp.float32)
    o_ref[...] = out.reshape(b_blk, seq, dim_o).astype(o_ref.dtype)


# --------------------------------------------------------------------------- #
# Sizing helpers                                                              #
# --------------------------------------------------------------------------- #
def _vmem_limits():
    """Generation-aware (budget_for_picker, vmem_limit_bytes)."""
    default_cap = 64 * 1024 * 1024          # conservative: v7x per-core VMEM
    try:
        cap = int(getattr(pltpu.get_tpu_info(), "vmem_capacity_bytes", 0))
    except Exception:
        cap = 0
    cap = cap or default_cap
    vmem_limit = int(cap * 0.80)            # ~102 MiB v5e/v6e, ~51 MiB v7x
    budget = int(vmem_limit * 0.70)         # headroom for compiler scratch/spill
    return budget, vmem_limit


def _pick_kv_tile(seq, cap=512):
    """Largest divisor of seq that is <= cap (single tile if seq <= cap)."""
    if seq <= cap:
        return seq
    best = 1
    for t in range(1, cap + 1):
        if seq % t == 0:
            best = t
    return best


def _step_vmem_bytes(b, S, dim_e, dim_k, dim_v, dim_o, num_heads, kv_tile,
                     cdt_size, out_size, weight_bufs):
    m = b * S
    hqk = dim_k // num_heads
    hv = dim_v // num_heads
    # double-buffered x / out pipeline blocks
    io = 2 * m * dim_e * cdt_size + 2 * m * dim_o * out_size
    # grid-invariant weights, times their pipeline buffer count
    weights = weight_bufs * (2 * dim_e * dim_k + dim_e * dim_v
                             + dim_v * dim_o) * cdt_size
    # q / k / v values (compute dtype) plus their transient f32 MXU results
    qkv = m * (2 * dim_k + dim_v) * (cdt_size + 4)
    # per-head flash working set: head slices, f32 score+exp tiles, (m,l,acc)
    head = (m * (2 * hqk + hv) * cdt_size
            + 2 * b * S * kv_tile * 4
            + m * (hv + 2) * 4)
    # merged attention values + f32 output-projection result
    tail = m * dim_v * cdt_size + m * dim_o * 4
    return io + weights + qkv + head + tail


def _pick_batch_block(B, S, dim_e, dim_k, dim_v, dim_o, num_heads, kv_tile,
                      cdt_size, out_size, weight_bufs, budget_bytes):
    # Keep the grid length >= 2 so (a) v7x's two TensorCores both get work and
    # (b) the BlockSpec pipeline can overlap the x/out DMAs with compute.
    max_b = B if B == 1 else B // 2
    best = 1
    for b in range(1, max_b + 1):
        if B % b == 0 and _step_vmem_bytes(
                b, S, dim_e, dim_k, dim_v, dim_o, num_heads, kv_tile,
                cdt_size, out_size, weight_bufs) <= budget_bytes:
            best = b
    return best


# --------------------------------------------------------------------------- #
# Wrapper                                                                     #
# --------------------------------------------------------------------------- #
def multihead_attention(x, w_q, w_k, w_v, w_o, num_heads, *,
                        compute_dtype=jnp.bfloat16, kv_tile_cap=512):
    """x: [B, S, dim_e]; weights stored as (in, out) so projection is x @ W.

    compute_dtype: MXU input dtype (default bf16; matmuls still accumulate in
    f32 and the softmax stays f32).  Pass jnp.float32 for exact-parity checks.
    """
    B, S, dim_e = x.shape
    dim_k = w_q.shape[1]
    dim_v = w_v.shape[1]
    dim_o = w_o.shape[1]
    assert dim_k % num_heads == 0, "dim_k must be divisible by num_heads"
    assert dim_v % num_heads == 0, "dim_v must be divisible by num_heads"
    # NOTE: the PyTorch module's .view() additionally requires dim_v == dim_k;
    # this kernel generalises but matches the module exactly when they're equal.

    out_dtype = x.dtype
    if compute_dtype is not None:
        x = x.astype(compute_dtype)
        w_q, w_k, w_v, w_o = (w.astype(compute_dtype)
                              for w in (w_q, w_k, w_v, w_o))

    head_qk = dim_k // num_heads
    head_v = dim_v // num_heads
    scale = 1.0 / math.sqrt(head_qk)
    kv_tile = _pick_kv_tile(S, kv_tile_cap)
    budget, vmem_limit = _vmem_limits()

    def run(single_buffer_weights):
        wbufs = 1 if single_buffer_weights else 2
        b_blk = _pick_batch_block(B, S, dim_e, dim_k, dim_v, dim_o, num_heads,
                                  kv_tile, x.dtype.itemsize, out_dtype.itemsize,
                                  wbufs, budget)
        grid = (B // b_blk,)
        kernel = functools.partial(_mha_kernel, num_heads=num_heads,
                                   head_qk=head_qk, head_v=head_v,
                                   scale=scale, kv_tile=kv_tile)

        def wspec(shape):
            if single_buffer_weights:
                # grid-invariant weights: one VMEM buffer instead of two
                return pl.BlockSpec(shape, lambda i: (0, 0),
                                    pipeline_mode=pl.Buffered(1))
            return pl.BlockSpec(shape, lambda i: (0, 0))

        return pl.pallas_call(
            kernel,
            out_shape=jax.ShapeDtypeStruct((B, S, dim_o), out_dtype),
            grid_spec=pltpu.PrefetchScalarGridSpec(
                num_scalar_prefetch=0,
                grid=grid,
                in_specs=[
                    pl.BlockSpec((b_blk, S, dim_e), lambda i: (i, 0, 0)),
                    wspec((dim_e, dim_k)),
                    wspec((dim_e, dim_k)),
                    wspec((dim_e, dim_v)),
                    wspec((dim_v, dim_o)),
                ],
                out_specs=pl.BlockSpec((b_blk, S, dim_o), lambda i: (i, 0, 0)),
            ),
            compiler_params=pltpu.CompilerParams(
                dimension_semantics=("parallel",),
                vmem_limit_bytes=vmem_limit,
            ),
        )(x, w_q, w_k, w_v, w_o)

    try:
        out = run(True)
    except Exception:
        # pipeline_mode=pl.Buffered(1) unsupported on this jax/Mosaic build —
        # fall back to default double-buffered weight blocks.
        out = run(False)

    # PyTorch: output.squeeze(dim=1) -> only squeezes if seq length is 1.
    if out.shape[1] == 1:
        out = jnp.squeeze(out, axis=1)
    return out


# --------------------------------------------------------------------------- #
# Reference & demo                                                            #
# --------------------------------------------------------------------------- #
def _xavier_uniform(key, fan_in, fan_out, dtype=jnp.float32):
    bound = math.sqrt(6.0 / (fan_in + fan_out))
    return jax.random.uniform(key, (fan_in, fan_out), dtype,
                              minval=-bound, maxval=bound)


def _reference(x, w_q, w_k, w_v, w_o, num_heads):
    B, S, _ = x.shape
    dim_k = w_q.shape[1]
    dim_v = w_v.shape[1]
    hd = dim_k // num_heads
    q = (x @ w_q).reshape(B, S, num_heads, hd).transpose(0, 2, 1, 3)
    k = (x @ w_k).reshape(B, S, num_heads, hd).transpose(0, 2, 1, 3)
    v = (x @ w_v).reshape(B, S, num_heads, hd).transpose(0, 2, 1, 3)
    s = jnp.einsum("bhqd,bhkd->bhqk", q, k) / math.sqrt(hd)
    p = jax.nn.softmax(s, axis=-1)
    av = jnp.einsum("bhqk,bhkd->bhqd", p, v)
    av = av.transpose(0, 2, 1, 3).reshape(B, S, dim_v)
    out = av @ w_o
    return jnp.squeeze(out, axis=1) if out.shape[1] == 1 else out


if __name__ == "__main__":
    # Small, module-consistent shapes (dropout is identity in eval mode).
    B, S = 2, 8
    dim_e, dim_k, dim_v, dim_o = 32, 32, 32, 32
    num_heads = 4

    key = jax.random.PRNGKey(0)
    kx, kq, kk, kv, ko = jax.random.split(key, 5)

    x = jax.random.normal(kx, (B, S, dim_e), dtype=jnp.float32)
    # nn.Linear(dim_e, dim_k) weight is (dim_k, dim_e); we store the transpose
    # (in, out) so the kernel does x @ W.  Xavier-uniform is symmetric in
    # fan_in/fan_out so the distribution matches.
    w_q = _xavier_uniform(kq, dim_e, dim_k)
    w_k = _xavier_uniform(kk, dim_e, dim_k)
    w_v = _xavier_uniform(kv, dim_e, dim_v)
    w_o = _xavier_uniform(ko, dim_v, dim_o)

    ref = _reference(x, w_q, w_k, w_v, w_o, num_heads)

    # Exact-parity path (f32 MXU inputs).
    out_f32 = multihead_attention(x, w_q, w_k, w_v, w_o, num_heads,
                                  compute_dtype=jnp.float32)
    out_f32 = jax.block_until_ready(out_f32)
    assert out_f32.shape == ref.shape
    assert jnp.allclose(out_f32, ref, atol=1e-4, rtol=1e-4)

    # Default fast path (bf16 MXU inputs, f32 accumulation + f32 softmax).
    out_bf16 = multihead_attention(x, w_q, w_k, w_v, w_o, num_heads)
    out_bf16 = jax.block_until_ready(out_bf16)
    assert out_bf16.shape == ref.shape
    assert jnp.allclose(out_bf16, ref, atol=5e-2, rtol=5e-2)

    print("KERNEL_OK")
</pallas_src>

<mosaic_0001>
module attributes {stable_mosaic.version = 11 : i64} {
  func.func @_mha_kernel(%arg0: i32, %arg1: memref<1x8x32xf32, #tpu.memory_space<vmem>>, %arg2: memref<32x32xf32, #tpu.memory_space<vmem>>, %arg3: memref<32x32xf32, #tpu.memory_space<vmem>>, %arg4: memref<32x32xf32, #tpu.memory_space<vmem>>, %arg5: memref<32x32xf32, #tpu.memory_space<vmem>>, %arg6: memref<1x8x32xf32, #tpu.memory_space<vmem>>) attributes {dimension_semantics = [#tpu.dimension_semantics<parallel>], iteration_bounds = array<i64: 2>, scalar_prefetch = 0 : i64, scratch_operands = 0 : i64, tpu.core_type = #tpu.core_type<tc>, window_params = [{transform_indices = @transform_0, window_bounds = array<i64: 1, 8, 32>}, {pipeline_mode = #tpu.pipeline_mode<synchronous>, transform_indices = @transform_1, window_bounds = array<i64: 32, 32>}, {pipeline_mode = #tpu.pipeline_mode<synchronous>, transform_indices = @transform_2, window_bounds = array<i64: 32, 32>}, {pipeline_mode = #tpu.pipeline_mode<synchronous>, transform_indices = @transform_3, window_bounds = array<i64: 32, 32>}, {pipeline_mode = #tpu.pipeline_mode<synchronous>, transform_indices = @transform_4, window_bounds = array<i64: 32, 32>}, {transform_indices = @transform_5, window_bounds = array<i64: 1, 8, 32>}]} {
    %c0 = arith.constant 0 : index
    %c0_0 = arith.constant 0 : index
    %c0_1 = arith.constant 0 : index
    %0 = vector.load %arg1[%c0, %c0_0, %c0_1] : memref<1x8x32xf32, #tpu.memory_space<vmem>>, vector<1x8x32xf32>
    %1 = vector.shape_cast %0 : vector<1x8x32xf32> to vector<8x32xf32>
    %c0_2 = arith.constant 0 : index
    %c0_3 = arith.constant 0 : index
    %2 = vector.load %arg2[%c0_2, %c0_3] : memref<32x32xf32, #tpu.memory_space<vmem>>, vector<32x32xf32>
    %cst = arith.constant dense<0.000000e+00> : vector<8x32xf32>
    %3 = tpu.matmul %1, %2, %cst {dimension_numbers = #tpu.dot_dimension_numbers<[1], [0], [0], [1], [0, 0, 1, 1], [], []>} : vector<8x32xf32>, vector<32x32xf32>, vector<8x32xf32> -> vector<8x32xf32>
    %cst_4 = arith.constant 0.353553385 : f32
    %4 = vector.broadcast %cst_4 : f32 to vector<8x32xf32>
    %5 = arith.mulf %3, %4 : vector<8x32xf32>
    %c0_5 = arith.constant 0 : index
    %c0_6 = arith.constant 0 : index
    %6 = vector.load %arg3[%c0_5, %c0_6] : memref<32x32xf32, #tpu.memory_space<vmem>>, vector<32x32xf32>
    %cst_7 = arith.constant dense<0.000000e+00> : vector<8x32xf32>
    %7 = tpu.matmul %1, %6, %cst_7 {dimension_numbers = #tpu.dot_dimension_numbers<[1], [0], [0], [1], [0, 0, 1, 1], [], []>} : vector<8x32xf32>, vector<32x32xf32>, vector<8x32xf32> -> vector<8x32xf32>
    %c0_8 = arith.constant 0 : index
    %c0_9 = arith.constant 0 : index
    %8 = vector.load %arg4[%c0_8, %c0_9] : memref<32x32xf32, #tpu.memory_space<vmem>>, vector<32x32xf32>
    %cst_10 = arith.constant dense<0.000000e+00> : vector<8x32xf32>
    %9 = tpu.matmul %1, %8, %cst_10 {dimension_numbers = #tpu.dot_dimension_numbers<[1], [0], [0], [1], [0, 0, 1, 1], [], []>} : vector<8x32xf32>, vector<32x32xf32>, vector<8x32xf32> -> vector<8x32xf32>
    %10 = vector.shape_cast %5 : vector<8x32xf32> to vector<1x8x32xf32>
    %11 = vector.shape_cast %7 : vector<8x32xf32> to vector<1x8x32xf32>
    %12 = vector.shape_cast %9 : vector<8x32xf32> to vector<1x8x32xf32>
    %13 = vector.extract_strided_slice %10 {offsets = [0, 0, 0], sizes = [1, 8, 8], strides = [1, 1, 1]} : vector<1x8x32xf32> to vector<1x8x8xf32>
    %14 = vector.extract_strided_slice %11 {offsets = [0, 0, 0], sizes = [1, 8, 8], strides = [1, 1, 1]} : vector<1x8x32xf32> to vector<1x8x8xf32>
    %15 = vector.extract_strided_slice %12 {offsets = [0, 0, 0], sizes = [1, 8, 8], strides = [1, 1, 1]} : vector<1x8x32xf32> to vector<1x8x8xf32>
    "tpu.trace_start"() <{level = 10 : i32, message = "bqd,bkd->bqk"}> : () -> ()
    %cst_11 = arith.constant dense<0.000000e+00> : vector<1x8x8xf32>
    %16 = tpu.matmul %13, %14, %cst_11 {dimension_numbers = #tpu.dot_dimension_numbers<[2], [2], [1], [1], [0, 0, 0, 1, 1, 1], [0], [0]>} : vector<1x8x8xf32>, vector<1x8x8xf32>, vector<1x8x8xf32> -> vector<1x8x8xf32>
    "tpu.trace_stop"() : () -> ()
    %cst_12 = arith.constant dense<0xFF800000> : vector<1x8xf32>
    %17 = vector.multi_reduction <maximumf>, %16, %cst_12 [2] : vector<1x8x8xf32> to vector<1x8xf32>
    %18 = vector.shape_cast %17 : vector<1x8xf32> to vector<1x8x1xf32>
    %19 = vector.broadcast %18 : vector<1x8x1xf32> to vector<1x8x8xf32>
    %20 = arith.subf %16, %19 : vector<1x8x8xf32>
    %21 = math.exp %20 : vector<1x8x8xf32>
    %cst_13 = arith.constant dense<0.000000e+00> : vector<1x8xf32>
    %22 = vector.multi_reduction <add>, %21, %cst_13 [2] : vector<1x8x8xf32> to vector<1x8xf32>
    %23 = vector.shape_cast %22 : vector<1x8xf32> to vector<1x8x1xf32>
    "tpu.trace_start"() <{level = 10 : i32, message = "bqk,bkd->bqd"}> : () -> ()
    %cst_14 = arith.constant dense<0.000000e+00> : vector<1x8x8xf32>
    %24 = tpu.matmul %21, %15, %cst_14 {dimension_numbers = #tpu.dot_dimension_numbers<[2], [1], [1], [2], [0, 0, 0, 1, 1, 2], [0], [0]>} : vector<1x8x8xf32>, vector<1x8x8xf32>, vector<1x8x8xf32> -> vector<1x8x8xf32>
    "tpu.trace_stop"() : () -> ()
    %25 = tpu.reciprocal %23 {approx = true} : vector<1x8x1xf32> -> vector<1x8x1xf32>
    %26 = arith.mulf %23, %25 : vector<1x8x1xf32>
    %cst_15 = arith.constant 2.000000e+00 : f32
    %27 = vector.broadcast %cst_15 : f32 to vector<1x8x1xf32>
    %28 = arith.subf %27, %26 : vector<1x8x1xf32>
    %29 = arith.mulf %25, %28 : vector<1x8x1xf32>
    %30 = vector.broadcast %29 : vector<1x8x1xf32> to vector<1x8x8xf32>
    %31 = arith.mulf %24, %30 : vector<1x8x8xf32>
    %32 = vector.extract_strided_slice %10 {offsets = [0, 0, 8], sizes = [1, 8, 8], strides = [1, 1, 1]} : vector<1x8x32xf32> to vector<1x8x8xf32>
    %33 = vector.extract_strided_slice %11 {offsets = [0, 0, 8], sizes = [1, 8, 8], strides = [1, 1, 1]} : vector<1x8x32xf32> to vector<1x8x8xf32>
    %34 = vector.extract_strided_slice %12 {offsets = [0, 0, 8], sizes = [1, 8, 8], strides = [1, 1, 1]} : vector<1x8x32xf32> to vector<1x8x8xf32>
    "tpu.trace_start"() <{level = 10 : i32, message = "bqd,bkd->bqk"}> : () -> ()
    %cst_16 = arith.constant dense<0.000000e+00> : vector<1x8x8xf32>
    %35 = tpu.matmul %32, %33, %cst_16 {dimension_numbers = #tpu.dot_dimension_numbers<[2], [2], [1], [1], [0, 0, 0, 1, 1, 1], [0], [0]>} : vector<1x8x8xf32>, vector<1x8x8xf32>, vector<1x8x8xf32> -> vector<1x8x8xf32>
    "tpu.trace_stop"() : () -> ()
    %cst_17 = arith.constant dense<0xFF800000> : vector<1x8xf32>
    %36 = vector.multi_reduction <maximumf>, %35, %cst_17 [2] : vector<1x8x8xf32> to vector<1x8xf32>
    %37 = vector.shape_cast %36 : vector<1x8xf32> to vector<1x8x1xf32>
    %38 = vector.broadcast %37 : vector<1x8x1xf32> to vector<1x8x8xf32>
    %39 = arith.subf %35, %38 : vector<1x8x8xf32>
    %40 = math.exp %39 : vector<1x8x8xf32>
    %cst_18 = arith.constant dense<0.000000e+00> : vector<1x8xf32>
    %41 = vector.multi_reduction <add>, %40, %cst_18 [2] : vector<1x8x8xf32> to vector<1x8xf32>
    %42 = vector.shape_cast %41 : vector<1x8xf32> to vector<1x8x1xf32>
    "tpu.trace_start"() <{level = 10 : i32, message = "bqk,bkd->bqd"}> : () -> ()
    %cst_19 = arith.constant dense<0.000000e+00> : vector<1x8x8xf32>
    %43 = tpu.matmul %40, %34, %cst_19 {dimension_numbers = #tpu.dot_dimension_numbers<[2], [1], [1], [2], [0, 0, 0, 1, 1, 2], [0], [0]>} : vector<1x8x8xf32>, vector<1x8x8xf32>, vector<1x8x8xf32> -> vector<1x8x8xf32>
    "tpu.trace_stop"() : () -> ()
    %44 = tpu.reciprocal %42 {approx = true} : vector<1x8x1xf32> -> vector<1x8x1xf32>
    %45 = arith.mulf %42, %44 : vector<1x8x1xf32>
    %cst_20 = arith.constant 2.000000e+00 : f32
    %46 = vector.broadcast %cst_20 : f32 to vector<1x8x1xf32>
    %47 = arith.subf %46, %45 : vector<1x8x1xf32>
    %48 = arith.mulf %44, %47 : vector<1x8x1xf32>
    %49 = vector.broadcast %48 : vector<1x8x1xf32> to vector<1x8x8xf32>
    %50 = arith.mulf %43, %49 : vector<1x8x8xf32>
    %51 = vector.extract_strided_slice %10 {offsets = [0, 0, 16], sizes = [1, 8, 8], strides = [1, 1, 1]} : vector<1x8x32xf32> to vector<1x8x8xf32>
    %52 = vector.extract_strided_slice %11 {offsets = [0, 0, 16], sizes = [1, 8, 8], strides = [1, 1, 1]} : vector<1x8x32xf32> to vector<1x8x8xf32>
    %53 = vector.extract_strided_slice %12 {offsets = [0, 0, 16], sizes = [1, 8, 8], strides = [1, 1, 1]} : vector<1x8x32xf32> to vector<1x8x8xf32>
    "tpu.trace_start"() <{level = 10 : i32, message = "bqd,bkd->bqk"}> : () -> ()
    %cst_21 = arith.constant dense<0.000000e+00> : vector<1x8x8xf32>
    %54 = tpu.matmul %51, %52, %cst_21 {dimension_numbers = #tpu.dot_dimension_numbers<[2], [2], [1], [1], [0, 0, 0, 1, 1, 1], [0], [0]>} : vector<1x8x8xf32>, vector<1x8x8xf32>, vector<1x8x8xf32> -> vector<1x8x8xf32>
    "tpu.trace_stop"() : () -> ()
    %cst_22 = arith.constant dense<0xFF800000> : vector<1x8xf32>
    %55 = vector.multi_reduction <maximumf>, %54, %cst_22 [2] : vector<1x8x8xf32> to vector<1x8xf32>
    %56 = vector.shape_cast %55 : vector<1x8xf32> to vector<1x8x1xf32>
    %57 = vector.broadcast %56 : vector<1x8x1xf32> to vector<1x8x8xf32>
    %58 = arith.subf %54, %57 : vector<1x8x8xf32>
    %59 = math.exp %58 : vector<1x8x8xf32>
    %cst_23 = arith.constant dense<0.000000e+00> : vector<1x8xf32>
    %60 = vector.multi_reduction <add>, %59, %cst_23 [2] : vector<1x8x8xf32> to vector<1x8xf32>
    %61 = vector.shape_cast %60 : vector<1x8xf32> to vector<1x8x1xf32>
    "tpu.trace_start"() <{level = 10 : i32, message = "bqk,bkd->bqd"}> : () -> ()
    %cst_24 = arith.constant dense<0.000000e+00> : vector<1x8x8xf32>
    %62 = tpu.matmul %59, %53, %cst_24 {dimension_numbers = #tpu.dot_dimension_numbers<[2], [1], [1], [2], [0, 0, 0, 1, 1, 2], [0], [0]>} : vector<1x8x8xf32>, vector<1x8x8xf32>, vector<1x8x8xf32> -> vector<1x8x8xf32>
    "tpu.trace_stop"() : () -> ()
    %63 = tpu.reciprocal %61 {approx = true} : vector<1x8x1xf32> -> vector<1x8x1xf32>
    %64 = arith.mulf %61, %63 : vector<1x8x1xf32>
    %cst_25 = arith.constant 2.000000e+00 : f32
    %65 = vector.broadcast %cst_25 : f32 to vector<1x8x1xf32>
    %66 = arith.subf %65, %64 : vector<1x8x1xf32>
    %67 = arith.mulf %63, %66 : vector<1x8x1xf32>
    %68 = vector.broadcast %67 : vector<1x8x1xf32> to vector<1x8x8xf32>
    %69 = arith.mulf %62, %68 : vector<1x8x8xf32>
    %70 = vector.extract_strided_slice %10 {offsets = [0, 0, 24], sizes = [1, 8, 8], strides = [1, 1, 1]} : vector<1x8x32xf32> to vector<1x8x8xf32>
    %71 = vector.extract_strided_slice %11 {offsets = [0, 0, 24], sizes = [1, 8, 8], strides = [1, 1, 1]} : vector<1x8x32xf32> to vector<1x8x8xf32>
    %72 = vector.extract_strided_slice %12 {offsets = [0, 0, 24], sizes = [1, 8, 8], strides = [1, 1, 1]} : vector<1x8x32xf32> to vector<1x8x8xf32>
    "tpu.trace_start"() <{level = 10 : i32, message = "bqd,bkd->bqk"}> : () -> ()
    %cst_26 = arith.constant dense<0.000000e+00> : vector<1x8x8xf32>
    %73 = tpu.matmul %70, %71, %cst_26 {dimension_numbers = #tpu.dot_dimension_numbers<[2], [2], [1], [1], [0, 0, 0, 1, 1, 1], [0], [0]>} : vector<1x8x8xf32>, vector<1x8x8xf32>, vector<1x8x8xf32> -> vector<1x8x8xf32>
    "tpu.trace_stop"() : () -> ()
    %cst_27 = arith.constant dense<0xFF800000> : vector<1x8xf32>
    %74 = vector.multi_reduction <maximumf>, %73, %cst_27 [2] : vector<1x8x8xf32> to vector<1x8xf32>
    %75 = vector.shape_cast %74 : vector<1x8xf32> to vector<1x8x1xf32>
    %76 = vector.broadcast %75 : vector<1x8x1xf32> to vector<1x8x8xf32>
    %77 = arith.subf %73, %76 : vector<1x8x8xf32>
    %78 = math.exp %77 : vector<1x8x8xf32>
    %cst_28 = arith.constant dense<0.000000e+00> : vector<1x8xf32>
    %79 = vector.multi_reduction <add>, %78, %cst_28 [2] : vector<1x8x8xf32> to vector<1x8xf32>
    %80 = vector.shape_cast %79 : vector<1x8xf32> to vector<1x8x1xf32>
    "tpu.trace_start"() <{level = 10 : i32, message = "bqk,bkd->bqd"}> : () -> ()
    %cst_29 = arith.constant dense<0.000000e+00> : vector<1x8x8xf32>
    %81 = tpu.matmul %78, %72, %cst_29 {dimension_numbers = #tpu.dot_dimension_numbers<[2], [1], [1], [2], [0, 0, 0, 1, 1, 2], [0], [0]>} : vector<1x8x8xf32>, vector<1x8x8xf32>, vector<1x8x8xf32> -> vector<1x8x8xf32>
    "tpu.trace_stop"() : () -> ()
    %82 = tpu.reciprocal %80 {approx = true} : vector<1x8x1xf32> -> vector<1x8x1xf32>
    %83 = arith.mulf %80, %82 : vector<1x8x1xf32>
    %cst_30 = arith.constant 2.000000e+00 : f32
    %84 = vector.broadcast %cst_30 : f32 to vector<1x8x1xf32>
    %85 = arith.subf %84, %83 : vector<1x8x1xf32>
    %86 = arith.mulf %82, %85 : vector<1x8x1xf32>
    %87 = vector.broadcast %86 : vector<1x8x1xf32> to vector<1x8x8xf32>
    %88 = arith.mulf %81, %87 : vector<1x8x8xf32>
    %89 = tpu.concatenate %31, %50, %69, %88 in 2 : vector<1x8x8xf32>, vector<1x8x8xf32>, vector<1x8x8xf32>, vector<1x8x8xf32> -> vector<1x8x32xf32>
    %90 = vector.shape_cast %89 : vector<1x8x32xf32> to vector<8x32xf32>
    %c0_31 = arith.constant 0 : index
    %c0_32 = arith.constant 0 : index
    %91 = vector.load %arg5[%c0_31, %c0_32] : memref<32x32xf32, #tpu.memory_space<vmem>>, vector<32x32xf32>
    %cst_33 = arith.constant dense<0.000000e+00> : vector<8x32xf32>
    %92 = tpu.matmul %90, %91, %cst_33 {dimension_numbers = #tpu.dot_dimension_numbers<[1], [0], [0], [1], [0, 0, 1, 1], [], []>} : vector<8x32xf32>, vector<32x32xf32>, vector<8x32xf32> -> vector<8x32xf32>
    %93 = vector.shape_cast %92 : vector<8x32xf32> to vector<1x8x32xf32>
    %c0_34 = arith.constant 0 : index
    %c0_35 = arith.constant 0 : index
    %c0_36 = arith.constant 0 : index
    %94 = vector.load %arg6[%c0_34, %c0_35, %c0_36] : memref<1x8x32xf32, #tpu.memory_space<vmem>>, vector<1x8x32xf32>
    tpu.vector_store %arg6[%c0_34, %c0_35, %c0_36], %93 {strides = array<i32>} : memref<1x8x32xf32, #tpu.memory_space<vmem>>, vector<1x8x32xf32>,
    return
  }
  func.func @transform_0(%arg0: i32) -> (i32, i32, i32) {
    %c0_i32 = arith.constant 0 : i32
    %c0_i32_0 = arith.constant 0 : i32
    %c0_i32_1 = arith.constant 0 : i32
    return %arg0, %c0_i32, %c0_i32_0 : i32, i32, i32
  }
  func.func @transform_1(%arg0: i32) -> (i32, i32) {
    %c0_i32 = arith.constant 0 : i32
    %c0_i32_0 = arith.constant 0 : i32
    %c0_i32_1 = arith.constant 0 : i32
    return %c0_i32, %c0_i32_0 : i32, i32
  }
  func.func @transform_2(%arg0: i32) -> (i32, i32) {
    %c0_i32 = arith.constant 0 : i32
    %c0_i32_0 = arith.constant 0 : i32
    %c0_i32_1 = arith.constant 0 : i32
    return %c0_i32, %c0_i32_0 : i32, i32
  }
  func.func @transform_3(%arg0: i32) -> (i32, i32) {
    %c0_i32 = arith.constant 0 : i32
    %c0_i32_0 = arith.constant 0 : i32
    %c0_i32_1 = arith.constant 0 : i32
    return %c0_i32, %c0_i32_0 : i32, i32
  }
  func.func @transform_4(%arg0: i32) -> (i32, i32) {
    %c0_i32 = arith.constant 0 : i32
    %c0_i32_0 = arith.constant 0 : i32
    %c0_i32_1 = arith.constant 0 : i32
    return %c0_i32, %c0_i32_0 : i32, i32
  }
  func.func @transform_5(%arg0: i32) -> (i32, i32, i32) {
    %c0_i32 = arith.constant 0 : i32
    %c0_i32_0 = arith.constant 0 : i32
    %c0_i32_1 = arith.constant 0 : i32
    return %arg0, %c0_i32, %c0_i32_0 : i32, i32, i32
  }
}

module attributes {stable_mosaic.version = 11 : i64} {
  func.func @_mha_kernel(%arg0: i32, %arg1: memref<1x8x32xf32, #tpu.memory_space<vmem>>, %arg2: memref<32x32xf32, #tpu.memory_space<vmem>>, %arg3: memref<32x32xf32, #tpu.memory_space<vmem>>, %arg4: memref<32x32xf32, #tpu.memory_space<vmem>>, %arg5: memref<32x32xf32, #tpu.memory_space<vmem>>, %arg6: memref<1x8x32xf32, #tpu.memory_space<vmem>>) attributes {dimension_semantics = [#tpu.dimension_semantics<parallel>], iteration_bounds = array<i64: 2>, scalar_prefetch = 0 : i64, scratch_operands = 0 : i64, tpu.core_type = #tpu.core_type<tc>, window_params = [{transform_indices = @transform_0, window_bounds = array<i64: 1, 8, 32>}, {pipeline_mode = #tpu.pipeline_mode<synchronous>, transform_indices = @transform_1, window_bounds = array<i64: 32, 32>}, {pipeline_mode = #tpu.pipeline_mode<synchronous>, transform_indices = @transform_2, window_bounds = array<i64: 32, 32>}, {pipeline_mode = #tpu.pipeline_mode<synchronous>, transform_indices = @transform_3, window_bounds = array<i64: 32, 32>}, {pipeline_mode = #tpu.pipeline_mode<synchronous>, transform_indices = @transform_4, window_bounds = array<i64: 32, 32>}, {transform_indices = @transform_5, window_bounds = array<i64: 1, 8, 32>}]} {
    %c0 = arith.constant 0 : index
    %c0_0 = arith.constant 0 : index
    %c0_1 = arith.constant 0 : index
    %0 = vector.load %arg1[%c0, %c0_0, %c0_1] : memref<1x8x32xf32, #tpu.memory_space<vmem>>, vector<1x8x32xf32>
    %1 = vector.shape_cast %0 : vector<1x8x32xf32> to vector<8x32xf32>
    %c0_2 = arith.constant 0 : index
    %c0_3 = arith.constant 0 : index
    %2 = vector.load %arg2[%c0_2, %c0_3] : memref<32x32xf32, #tpu.memory_space<vmem>>, vector<32x32xf32>
    %cst = arith.constant dense<0.000000e+00> : vector<8x32xf32>
    %3 = tpu.matmul %1, %2, %cst {dimension_numbers = #tpu.dot_dimension_numbers<[1], [0], [0], [1], [0, 0, 1, 1], [], []>} : vector<8x32xf32>, vector<32x32xf32>, vector<8x32xf32> -> vector<8x32xf32>
    %cst_4 = arith.constant 0.353553385 : f32
    %4 = vector.broadcast %cst_4 : f32 to vector<8x32xf32>
    %5 = arith.mulf %3, %4 : vector<8x32xf32>
    %c0_5 = arith.constant 0 : index
    %c0_6 = arith.constant 0 : index
    %6 = vector.load %arg3[%c0_5, %c0_6] : memref<32x32xf32, #tpu.memory_space<vmem>>, vector<32x32xf32>
    %cst_7 = arith.constant dense<0.000000e+00> : vector<8x32xf32>
    %7 = tpu.matmul %1, %6, %cst_7 {dimension_numbers = #tpu.dot_dimension_numbers<[1], [0], [0], [1], [0, 0, 1, 1], [], []>} : vector<8x32xf32>, vector<32x32xf32>, vector<8x32xf32> -> vector<8x32xf32>
    %c0_8 = arith.constant 0 : index
    %c0_9 = arith.constant 0 : index
    %8 = vector.load %arg4[%c0_8, %c0_9] : memref<32x32xf32, #tpu.memory_space<vmem>>, vector<32x32xf32>
    %cst_10 = arith.constant dense<0.000000e+00> : vector<8x32xf32>
    %9 = tpu.matmul %1, %8, %cst_10 {dimension_numbers = #tpu.dot_dimension_numbers<[1], [0], [0], [1], [0, 0, 1, 1], [], []>} : vector<8x32xf32>, vector<32x32xf32>, vector<8x32xf32> -> vector<8x32xf32>
    %10 = vector.shape_cast %5 : vector<8x32xf32> to vector<1x8x32xf32>
    %11 = vector.shape_cast %7 : vector<8x32xf32> to vector<1x8x32xf32>
    %12 = vector.shape_cast %9 : vector<8x32xf32> to vector<1x8x32xf32>
    %13 = vector.extract_strided_slice %10 {offsets = [0, 0, 0], sizes = [1, 8, 8], strides = [1, 1, 1]} : vector<1x8x32xf32> to vector<1x8x8xf32>
    %14 = vector.extract_strided_slice %11 {offsets = [0, 0, 0], sizes = [1, 8, 8], strides = [1, 1, 1]} : vector<1x8x32xf32> to vector<1x8x8xf32>
    %15 = vector.extract_strided_slice %12 {offsets = [0, 0, 0], sizes = [1, 8, 8], strides = [1, 1, 1]} : vector<1x8x32xf32> to vector<1x8x8xf32>
    "tpu.trace_start"() <{level = 10 : i32, message = "bqd,bkd->bqk"}> : () -> ()
    %cst_11 = arith.constant dense<0.000000e+00> : vector<1x8x8xf32>
    %16 = tpu.matmul %13, %14, %cst_11 {dimension_numbers = #tpu.dot_dimension_numbers<[2], [2], [1], [1], [0, 0, 0, 1, 1, 1], [0], [0]>} : vector<1x8x8xf32>, vector<1x8x8xf32>, vector<1x8x8xf32> -> vector<1x8x8xf32>
    "tpu.trace_stop"() : () -> ()
    %cst_12 = arith.constant dense<0xFF800000> : vector<1x8xf32>
    %17 = vector.multi_reduction <maximumf>, %16, %cst_12 [2] : vector<1x8x8xf32> to vector<1x8xf32>
    %18 = vector.shape_cast %17 : vector<1x8xf32> to vector<1x8x1xf32>
    %19 = vector.broadcast %18 : vector<1x8x1xf32> to vector<1x8x8xf32>
    %20 = arith.subf %16, %19 : vector<1x8x8xf32>
    %21 = math.exp %20 : vector<1x8x8xf32>
    %cst_13 = arith.constant dense<0.000000e+00> : vector<1x8xf32>
    %22 = vector.multi_reduction <add>, %21, %cst_13 [2] : vector<1x8x8xf32> to vector<1x8xf32>
    %23 = vector.shape_cast %22 : vector<1x8xf32> to vector<1x8x1xf32>
    "tpu.trace_start"() <{level = 10 : i32, message = "bqk,bkd->bqd"}> : () -> ()
    %cst_14 = arith.constant dense<0.000000e+00> : vector<1x8x8xf32>
    %24 = tpu.matmul %21, %15, %cst_14 {dimension_numbers = #tpu.dot_dimension_numbers<[2], [1], [1], [2], [0, 0, 0, 1, 1, 2], [0], [0]>} : vector<1x8x8xf32>, vector<1x8x8xf32>, vector<1x8x8xf32> -> vector<1x8x8xf32>
    "tpu.trace_stop"() : () -> ()
    %25 = tpu.reciprocal %23 {approx = true} : vector<1x8x1xf32> -> vector<1x8x1xf32>
    %26 = arith.mulf %23, %25 : vector<1x8x1xf32>
    %cst_15 = arith.constant 2.000000e+00 : f32
    %27 = vector.broadcast %cst_15 : f32 to vector<1x8x1xf32>
    %28 = arith.subf %27, %26 : vector<1x8x1xf32>
    %29 = arith.mulf %25, %28 : vector<1x8x1xf32>
    %30 = vector.broadcast %29 : vector<1x8x1xf32> to vector<1x8x8xf32>
    %31 = arith.mulf %24, %30 : vector<1x8x8xf32>
    %32 = vector.extract_strided_slice %10 {offsets = [0, 0, 8], sizes = [1, 8, 8], strides = [1, 1, 1]} : vector<1x8x32xf32> to vector<1x8x8xf32>
    %33 = vector.extract_strided_slice %11 {offsets = [0, 0, 8], sizes = [1, 8, 8], strides = [1, 1, 1]} : vector<1x8x32xf32> to vector<1x8x8xf32>
    %34 = vector.extract_strided_slice %12 {offsets = [0, 0, 8], sizes = [1, 8, 8], strides = [1, 1, 1]} : vector<1x8x32xf32> to vector<1x8x8xf32>
    "tpu.trace_start"() <{level = 10 : i32, message = "bqd,bkd->bqk"}> : () -> ()
    %cst_16 = arith.constant dense<0.000000e+00> : vector<1x8x8xf32>
    %35 = tpu.matmul %32, %33, %cst_16 {dimension_numbers = #tpu.dot_dimension_numbers<[2], [2], [1], [1], [0, 0, 0, 1, 1, 1], [0], [0]>} : vector<1x8x8xf32>, vector<1x8x8xf32>, vector<1x8x8xf32> -> vector<1x8x8xf32>
    "tpu.trace_stop"() : () -> ()
    %cst_17 = arith.constant dense<0xFF800000> : vector<1x8xf32>
    %36 = vector.multi_reduction <maximumf>, %35, %cst_17 [2] : vector<1x8x8xf32> to vector<1x8xf32>
    %37 = vector.shape_cast %36 : vector<1x8xf32> to vector<1x8x1xf32>
    %38 = vector.broadcast %37 : vector<1x8x1xf32> to vector<1x8x8xf32>
    %39 = arith.subf %35, %38 : vector<1x8x8xf32>
    %40 = math.exp %39 : vector<1x8x8xf32>
    %cst_18 = arith.constant dense<0.000000e+00> : vector<1x8xf32>
    %41 = vector.multi_reduction <add>, %40, %cst_18 [2] : vector<1x8x8xf32> to vector<1x8xf32>
    %42 = vector.shape_cast %41 : vector<1x8xf32> to vector<1x8x1xf32>
    "tpu.trace_start"() <{level = 10 : i32, message = "bqk,bkd->bqd"}> : () -> ()
    %cst_19 = arith.constant dense<0.000000e+00> : vector<1x8x8xf32>
    %43 = tpu.matmul %40, %34, %cst_19 {dimension_numbers = #tpu.dot_dimension_numbers<[2], [1], [1], [2], [0, 0, 0, 1, 1, 2], [0], [0]>} : vector<1x8x8xf32>, vector<1x8x8xf32>, vector<1x8x8xf32> -> vector<1x8x8xf32>
    "tpu.trace_stop"() : () -> ()
    %44 = tpu.reciprocal %42 {approx = true} : vector<1x8x1xf32> -> vector<1x8x1xf32>
    %45 = arith.mulf %42, %44 : vector<1x8x1xf32>
    %cst_20 = arith.constant 2.000000e+00 : f32
    %46 = vector.broadcast %cst_20 : f32 to vector<1x8x1xf32>
    %47 = arith.subf %46, %45 : vector<1x8x1xf32>
    %48 = arith.mulf %44, %47 : vector<1x8x1xf32>
    %49 = vector.broadcast %48 : vector<1x8x1xf32> to vector<1x8x8xf32>
    %50 = arith.mulf %43, %49 : vector<1x8x8xf32>
    %51 = vector.extract_strided_slice %10 {offsets = [0, 0, 16], sizes = [1, 8, 8], strides = [1, 1, 1]} : vector<1x8x32xf32> to vector<1x8x8xf32>
    %52 = vector.extract_strided_slice %11 {offsets = [0, 0, 16], sizes = [1, 8, 8], strides = [1, 1, 1]} : vector<1x8x32xf32> to vector<1x8x8xf32>
    %53 = vector.extract_strided_slice %12 {offsets = [0, 0, 16], sizes = [1, 8, 8], strides = [1, 1, 1]} : vector<1x8x32xf32> to vector<1x8x8xf32>
    "tpu.trace_start"() <{level = 10 : i32, message = "bqd,bkd->bqk"}> : () -> ()
    %cst_21 = arith.constant dense<0.000000e+00> : vector<1x8x8xf32>
    %54 = tpu.matmul %51, %52, %cst_21 {dimension_numbers = #tpu.dot_dimension_numbers<[2], [2], [1], [1], [0, 0, 0, 1, 1, 1], [0], [0]>} : vector<1x8x8xf32>, vector<1x8x8xf32>, vector<1x8x8xf32> -> vector<1x8x8xf32>
    "tpu.trace_stop"() : () -> ()
    %cst_22 = arith.constant dense<0xFF800000> : vector<1x8xf32>
    %55 = vector.multi_reduction <maximumf>, %54, %cst_22 [2] : vector<1x8x8xf32> to vector<1x8xf32>
    %56 = vector.shape_cast %55 : vector<1x8xf32> to vector<1x8x1xf32>
    %57 = vector.broadcast %56 : vector<1x8x1xf32> to vector<1x8x8xf32>
    %58 = arith.subf %54, %57 : vector<1x8x8xf32>
    %59 = math.exp %58 : vector<1x8x8xf32>
    %cst_23 = arith.constant dense<0.000000e+00> : vector<1x8xf32>
    %60 = vector.multi_reduction <add>, %59, %cst_23 [2] : vector<1x8x8xf32> to vector<1x8xf32>
    %61 = vector.shape_cast %60 : vector<1x8xf32> to vector<1x8x1xf32>
    "tpu.trace_start"() <{level = 10 : i32, message = "bqk,bkd->bqd"}> : () -> ()
    %cst_24 = arith.constant dense<0.000000e+00> : vector<1x8x8xf32>
    %62 = tpu.matmul %59, %53, %cst_24 {dimension_numbers = #tpu.dot_dimension_numbers<[2], [1], [1], [2], [0, 0, 0, 1, 1, 2], [0], [0]>} : vector<1x8x8xf32>, vector<1x8x8xf32>, vector<1x8x8xf32> -> vector<1x8x8xf32>
    "tpu.trace_stop"() : () -> ()
    %63 = tpu.reciprocal %61 {approx = true} : vector<1x8x1xf32> -> vector<1x8x1xf32>
    %64 = arith.mulf %61, %63 : vector<1x8x1xf32>
    %cst_25 = arith.constant 2.000000e+00 : f32
    %65 = vector.broadcast %cst_25 : f32 to vector<1x8x1xf32>
    %66 = arith.subf %65, %64 : vector<1x8x1xf32>
    %67 = arith.mulf %63, %66 : vector<1x8x1xf32>
    %68 = vector.broadcast %67 : vector<1x8x1xf32> to vector<1x8x8xf32>
    %69 = arith.mulf %62, %68 : vector<1x8x8xf32>
    %70 = vector.extract_strided_slice %10 {offsets = [0, 0, 24], sizes = [1, 8, 8], strides = [1, 1, 1]} : vector<1x8x32xf32> to vector<1x8x8xf32>
    %71 = vector.extract_strided_slice %11 {offsets = [0, 0, 24], sizes = [1, 8, 8], strides = [1, 1, 1]} : vector<1x8x32xf32> to vector<1x8x8xf32>
    %72 = vector.extract_strided_slice %12 {offsets = [0, 0, 24], sizes = [1, 8, 8], strides = [1, 1, 1]} : vector<1x8x32xf32> to vector<1x8x8xf32>
    "tpu.trace_start"() <{level = 10 : i32, message = "bqd,bkd->bqk"}> : () -> ()
    %cst_26 = arith.constant dense<0.000000e+00> : vector<1x8x8xf32>
    %73 = tpu.matmul %70, %71, %cst_26 {dimension_numbers = #tpu.dot_dimension_numbers<[2], [2], [1], [1], [0, 0, 0, 1, 1, 1], [0], [0]>} : vector<1x8x8xf32>, vector<1x8x8xf32>, vector<1x8x8xf32> -> vector<1x8x8xf32>
    "tpu.trace_stop"() : () -> ()
    %cst_27 = arith.constant dense<0xFF800000> : vector<1x8xf32>
    %74 = vector.multi_reduction <maximumf>, %73, %cst_27 [2] : vector<1x8x8xf32> to vector<1x8xf32>
    %75 = vector.shape_cast %74 : vector<1x8xf32> to vector<1x8x1xf32>
    %76 = vector.broadcast %75 : vector<1x8x1xf32> to vector<1x8x8xf32>
    %77 = arith.subf %73, %76 : vector<1x8x8xf32>
    %78 = math.exp %77 : vector<1x8x8xf32>
    %cst_28 = arith.constant dense<0.000000e+00> : vector<1x8xf32>
    %79 = vector.multi_reduction <add>, %78, %cst_28 [2] : vector<1x8x8xf32> to vector<1x8xf32>
    %80 = vector.shape_cast %79 : vector<1x8xf32> to vector<1x8x1xf32>
    "tpu.trace_start"() <{level = 10 : i32, message = "bqk,bkd->bqd"}> : () -> ()
    %cst_29 = arith.constant dense<0.000000e+00> : vector<1x8x8xf32>
    %81 = tpu.matmul %78, %72, %cst_29 {dimension_numbers = #tpu.dot_dimension_numbers<[2], [1], [1], [2], [0, 0, 0, 1, 1, 2], [0], [0]>} : vector<1x8x8xf32>, vector<1x8x8xf32>, vector<1x8x8xf32> -> vector<1x8x8xf32>
    "tpu.trace_stop"() : () -> ()
    %82 = tpu.reciprocal %80 {approx = true} : vector<1x8x1xf32> -> vector<1x8x1xf32>
    %83 = arith.mulf %80, %82 : vector<1x8x1xf32>
    %cst_30 = arith.constant 2.000000e+00 : f32
    %84 = vector.broadcast %cst_30 : f32 to vector<1x8x1xf32>
    %85 = arith.subf %84, %83 : vector<1x8x1xf32>
    %86 = arith.mulf %82, %85 : vector<1x8x1xf32>
    %87 = vector.broadcast %86 : vector<1x8x1xf32> to vector<1x8x8xf32>
    %88 = arith.mulf %81, %87 : vector<1x8x8xf32>
    %89 = tpu.concatenate %31, %50, %69, %88 in 2 : vector<1x8x8xf32>, vector<1x8x8xf32>, vector<1x8x8xf32>, vector<1x8x8xf32> -> vector<1x8x32xf32>
    %90 = vector.shape_cast %89 : vector<1x8x32xf32> to vector<8x32xf32>
    %c0_31 = arith.constant 0 : index
    %c0_32 = arith.constant 0 : index
    %91 = vector.load %arg5[%c0_31, %c0_32] : memref<32x32xf32, #tpu.memory_space<vmem>>, vector<32x32xf32>
    %cst_33 = arith.constant dense<0.000000e+00> : vector<8x32xf32>
    %92 = tpu.matmul %90, %91, %cst_33 {dimension_numbers = #tpu.dot_dimension_numbers<[1], [0], [0], [1], [0, 0, 1, 1], [], []>} : vector<8x32xf32>, vector<32x32xf32>, vector<8x32xf32> -> vector<8x32xf32>
    %93 = vector.shape_cast %92 : vector<8x32xf32> to vector<1x8x32xf32>
    %c0_34 = arith.constant 0 : index
    %c0_35 = arith.constant 0 : index
    %c0_36 = arith.constant 0 : index
    %94 = vector.load %arg6[%c0_34, %c0_35, %c0_36] : memref<1x8x32xf32, #tpu.memory_space<vmem>>, vector<1x8x32xf32>
    tpu.vector_store %arg6[%c0_34, %c0_35, %c0_36], %93 {strides = array<i32>} : memref<1x8x32xf32, #tpu.memory_space<vmem>>, vector<1x8x32xf32>,
    return
  }
  func.func @transform_0(%arg0: i32) -> (i32, i32, i32) {
    %c0_i32 = arith.constant 0 : i32
    %c0_i32_0 = arith.constant 0 : i32
    %c0_i32_1 = arith.constant 0 : i32
    return %arg0, %c0_i32, %c0_i32_0 : i32, i32, i32
  }
  func.func @transform_1(%arg0: i32) -> (i32, i32) {
    %c0_i32 = arith.constant 0 : i32
    %c0_i32_0 = arith.constant 0 : i32
    %c0_i32_1 = arith.constant 0 : i32
    return %c0_i32, %c0_i32_0 : i32, i32
  }
  func.func @transform_2(%arg0: i32) -> (i32, i32) {
    %c0_i32 = arith.constant 0 : i32
    %c0_i32_0 = arith.constant 0 : i32
    %c0_i32_1 = arith.constant 0 : i32
    return %c0_i32, %c0_i32_0 : i32, i32
  }
  func.func @transform_3(%arg0: i32) -> (i32, i32) {
    %c0_i32 = arith.constant 0 : i32
    %c0_i32_0 = arith.constant 0 : i32
    %c0_i32_1 = arith.constant 0 : i32
    return %c0_i32, %c0_i32_0 : i32, i32
  }
  func.func @transform_4(%arg0: i32) -> (i32, i32) {
    %c0_i32 = arith.constant 0 : i32
    %c0_i32_0 = arith.constant 0 : i32
    %c0_i32_1 = arith.constant 0 : i32
    return %c0_i32, %c0_i32_0 : i32, i32
  }
  func.func @transform_5(%arg0: i32) -> (i32, i32, i32) {
    %c0_i32 = arith.constant 0 : i32
    %c0_i32_0 = arith.constant 0 : i32
    %c0_i32_1 = arith.constant 0 : i32
    return %arg0, %c0_i32, %c0_i32_0 : i32, i32, i32
  }
}

</mosaic_0001>

<bundles_post_ra>
// kernel: tpu_custom_call.1
= control target key start
LH: loop header
LB: loop body
LE: loop exit
PB: predicated region body
PF: predicated region fallthrough
CT: control target
= control target key end

     0   :  { %10 = vsyncpa [#allocation3], 0  ;;  %s2345_s0 = inlined_call_operand.hbm [shape: f32[2,8,32], index: 0, kind: input, shape index: {}]   ;;  %s2346_s1 = inlined_call_operand.hbm [shape: f32[32,32], index: 1, kind: input, shape index: {}]   ;;  %s2347_s2 = inlined_call_operand.hbm [shape: f32[32,32], index: 2, kind: input, shape index: {}]   ;;  %s2348_s3 = inlined_call_operand.hbm [shape: f32[32,32], index: 3, kind: input, shape index: {}]   ;;  %s2349_s4 = inlined_call_operand.hbm [shape: f32[32,32], index: 4, kind: input, shape index: {}]   ;;  %s2350_s5 = inlined_call_operand.hbm [shape: f32[2,8,32], index: 5, kind: output, shape index: {}]  }
   0x1   :  { %12 = vsyncpa [#allocation3 + $0x1], 0 }
   0x2   :  { %13 = vsyncpa [#allocation6], 0 }
   0x3   :  { %14 = vsyncpa [#allocation9], 0 }
   0x4   :  { %15 = vsyncpa [#allocation4], 0 }
   0x5   :  { %17 = vsyncpa [#allocation4 + $0x1], 0  ;;  %s1971_s18 = smov 0   ;;  %s1973_s19 = smov 0  }
   0x6   :  { %s1975_s20 = smov 0   ;;  %s1977_s21 = smov 0  }
   0x7 LB: > { %s1924_s22 = smov [#allocation5]   ;;  %s1992_s24 = sadd.s32 4294967295, %s1922_s21   ;;  %s1922_s21 = sphi %s1977_s21, %s2374_s21   ;;  %s1918_s20 = sphi %s1975_s20, %s2373_s20   ;;  %s1914_s19 = sphi %s1973_s19, %s2372_s19   ;;  %s1910_s18 = sphi %s1971_s18, %s2371_s18  }
   0x8   : > { %s176_s23 = sshll.u32 %s1924_s22, 4  ;;  %p1413_p0 = scmp.ge.s32.totalorder %s1922_s21, 1  ;;  %s1997_s23 = int_to_ptr.vmem [resolvable:$true] %s176_s23 }
   0x9   : > { %p2351_p1 = scmp.eq.s32.totalorder %s1992_s24, 0  ;;  %p164_p2 = scmp.lt.s32.totalorder %s1922_s21, 3 }
   0xa   : > { %s1925_s26 = smov [#allocation8]   ;;  %s1926_s29 = smov [#allocation7]  }
   0xb   : > { %p1999_p3 = pnand %p1413_p0, %p164_p2  ;;  %s202_s27 = sshll.u32 %s1925_s26, 4  ;;  %s2012_s27 = int_to_ptr.vmem [resolvable:$true] %s202_s27 }
   0xc   : > { %s189_s30 = sshll.u32 %s1926_s29, 4  ;;  %s1706_s8 = scalar_lea.hbm %s2346_s1, 512  ;;  %s2014_s30 = int_to_ptr.vmem [resolvable:$true] %s189_s30 }
   0xd   : > { %s2354_s25 = scalar_select %p1999_p3, 1, 0 }
   0xe   : > { %p1612_p5 = pneg %p1999_p3  ;;  %p1707_p7 = scmp.ne.s32.totalorder %s2346_s1, %s1706_s8 }
   0xf   : > { %p1713_p11 = scmp.lt.u32.totalorder %s1706_s8, %s2346_s1 }
  0x10   : > { %p2008_p6 = pnand %p1612_p5, %p2351_p1 }
  0x12   : > { %p2024_p8 = pneg %p2008_p6 }
  0x14   : > { %p1709_p9 = pnand %p2024_p8, %p1707_p7 }
  0x16   : > { %p1710_p10 = pneg %p1709_p9 }
  0x18   : > { %p1715_p12 = pnand %p1713_p11, %p1710_p10 }
  0x1a   : > { %1718 = shalt.err (!%p1715_p12)
}
  0x1b   : > { %s1719_s14 = scalar_lea.vmem %s1997_s23, 512  ;;  %p1727_p5 = scmp.lt.s32.totalorder %s1997_s23, %s1997_s23 }
  0x1c   : > { %p1720_p13 = scmp.ne.s32.totalorder %s1997_s23, %s1719_s14  ;;  %p1728_p4 = scmp.lt.s32.totalorder %s1719_s14, %s1719_s14 }
  0x1e   : > { %p1722_p0 = pnand %p1720_p13, %p2024_p8  ;;  %p1729_p7 = por %p1728_p4, %p1727_p5 }
  0x20   : > { %p1723_p2 = pneg %p1722_p0 }
  0x22   : > { %p1730_p9 = pnand %p1729_p7, %p1723_p2 }
  0x24   : > { %1733 = shalt.err (!%p1730_p9)
}
  0x25   : > { %s1927_s15 = smov 128   ;;  %s1928_s16 = smov 8  }
  0x26   : > { %1615 = dma.hbm_to_vmem [thread:$0]  (!%p2008_p6), %s2346_s1, 512, %s1997_s23, [#allocation6], %s1927_s15, %s1927_s15, %s1928_s16  }
  0x27   : > { %s1734_s6 = scalar_lea.hbm %s2348_s3, 512 }
  0x28   : > { %p1735_p4 = scmp.ne.s32.totalorder %s2348_s3, %s1734_s6  ;;  %p1741_p12 = scmp.lt.u32.totalorder %s1734_s6, %s2348_s3 }
  0x2a   : > { %p1737_p10 = pnand %p1735_p4, %p2024_p8 }
  0x2c   : > { %p1738_p11 = pneg %p1737_p10 }
  0x2e   : > { %p1743_p13 = pnand %p1741_p12, %p1738_p11 }
  0x30   : > { %1746 = shalt.err (!%p1743_p13)
}
  0x31   : > { %s1747_s23 = scalar_lea.vmem %s2012_s27, 512  ;;  %p1755_p7 = scmp.lt.s32.totalorder %s2012_s27, %s2012_s27 }
  0x32   : > { %p1748_p0 = scmp.ne.s32.totalorder %s2012_s27, %s1747_s23  ;;  %p1756_p9 = scmp.lt.s32.totalorder %s1747_s23, %s1747_s23 }
  0x34   : > { %p1750_p2 = pnand %p1748_p0, %p2024_p8  ;;  %p1757_p4 = por %p1756_p9, %p1755_p7 }
  0x36   : > { %p1751_p5 = pneg %p1750_p2 }
  0x38   : > { %p1758_p10 = pnand %p1757_p4, %p1751_p5 }
  0x3a   : > { %1761 = shalt.err (!%p1758_p10)
}
  0x3b   : > { %1621 = dma.hbm_to_vmem [thread:$0]  (!%p2008_p6), %s2348_s3, 512, %s2012_s27, [#allocation9], %s1927_s15, %s1927_s15, %s1928_s16  }
  0x3c   : > { %s1762_s22 = scalar_lea.hbm %s2347_s2, 512 }
  0x3d   : > { %p1763_p11 = scmp.ne.s32.totalorder %s2347_s2, %s1762_s22  ;;  %p1769_p0 = scmp.lt.u32.totalorder %s1762_s22, %s2347_s2 }
  0x3f   : > { %p1765_p12 = pnand %p1763_p11, %p2024_p8 }
  0x41   : > { %p1766_p13 = pneg %p1765_p12 }
  0x43   : > { %p1771_p2 = pnand %p1769_p0, %p1766_p13 }
  0x45   : > { %1774 = shalt.err (!%p1771_p2)
}
  0x46   : > { %s1775_s27 = scalar_lea.vmem %s2014_s30, 512  ;;  %p1783_p4 = scmp.lt.s32.totalorder %s2014_s30, %s2014_s30 }
  0x47   : > { %p1776_p5 = scmp.ne.s32.totalorder %s2014_s30, %s1775_s27  ;;  %p1784_p10 = scmp.lt.s32.totalorder %s1775_s27, %s1775_s27 }
  0x49   : > { %p1778_p7 = pnand %p1776_p5, %p2024_p8  ;;  %p1785_p11 = por %p1784_p10, %p1783_p4 }
  0x4b   : > { %p1779_p9 = pneg %p1778_p7 }
  0x4d   : > { %p1786_p12 = pnand %p1785_p11, %p1779_p9 }
  0x4f   : > { %1789 = shalt.err (!%p1786_p12)
}
  0x50   : > { %1618 = dma.hbm_to_vmem [thread:$0]  (!%p2008_p6), %s2347_s2, 512, %s2014_s30, [#allocation6], %s1927_s15, %s1927_s15, %s1928_s16  }
  0x51   : > { %s1929_s10 = smov [#allocation10]   ;;  %s1790_s14 = scalar_lea.hbm %s2349_s4, 512 }
  0x52   : > { %s215_s23 = sshll.u32 %s1929_s10, 4  ;;  %p1791_p13 = scmp.ne.s32.totalorder %s2349_s4, %s1790_s14  ;;  %s216_s23 = int_to_ptr.vmem [resolvable:$true] %s215_s23 }
  0x53   : > { %p1797_p5 = scmp.lt.u32.totalorder %s1790_s14, %s2349_s4 }
  0x54   : > { %p1793_p0 = pnand %p1791_p13, %p2024_p8 }
  0x56   : > { %p1794_p2 = pneg %p1793_p0 }
  0x58   : > { %p1799_p7 = pnand %p1797_p5, %p1794_p2 }
  0x5a   : > { %1802 = shalt.err (!%p1799_p7)
}
  0x5b   : > { %s1803_s30 = scalar_lea.vmem %s216_s23, 512  ;;  %p1811_p11 = scmp.lt.s32.totalorder %s216_s23, %s216_s23 }
  0x5c   : > { %p1804_p9 = scmp.ne.s32.totalorder %s216_s23, %s1803_s30  ;;  %p1812_p12 = scmp.lt.s32.totalorder %s1803_s30, %s1803_s30 }
  0x5e   : > { %p1806_p4 = pnand %p1804_p9, %p2024_p8  ;;  %p1813_p1 = por %p1812_p12, %p1811_p11 }
  0x60   : > { %p1807_p10 = pneg %p1806_p4 }
  0x62   : > { %p1814_p3 = pnand %p1813_p1, %p1807_p10 }
  0x64   : > { %1817 = shalt.err (!%p1814_p3)
}
  0x65   : > { %1624 = dma.hbm_to_vmem [thread:$0]  (!%p2008_p6), %s2349_s4, 512, %s216_s23, [#allocation9], %s1927_s15, %s1927_s15, %s1928_s16  }
  0x66   : > { %s1412_s28 = sadd.s32 4294967294, %s1922_s21   ;;  %s2123_s11 = sadd.s32 1, %s1922_s21  }
  0x67   : > { %s27_s27 = ssub.s32 %s1922_s21, %s2123_s11  ;;  %s30_s8 = sadd.s32 1, %s1918_s20 }
  0x68   : > { %p28_p1 = scmp.eq.s32.totalorder %s27_s27, 0  ;;  %p37_p3 = scmp.ne.s32.totalorder %s1918_s20, %s1914_s19 }
  0x69   : > { %p38_p8 = scmp.eq.s32.totalorder %s1922_s21, 0  ;;  %p43_p13 = scmp.ne.s32.totalorder %s1914_s19, %s1910_s18 }
  0x6a   : > { %s2134_s9 = scalar_select %p28_p1, %s1918_s20, %s30_s8  }
  0x6b   : > { %p2136_p0 = por %p38_p8, %p37_p3  ;;  %p2358_p2 = scmp.eq.s32.totalorder %s1992_s24, 0 }
  0x6c   : > { %p151_p5 = scmp.eq.s32.totalorder %s1992_s24, 1  ;;  %p157_p7 = scmp.eq.s32.totalorder %s1412_s28, 1 }
  0x6d   : > { %p2142_p6 = por %p2358_p2, %p43_p13  ;;  %p1637_p9 = scmp.lt.s32.totalorder %s1922_s21, 2 }
  0x6e   : > { %s229_s16 = sand.u32 1, %s1918_s20   ;;  %p2149_p4 = por %p151_p5, %p37_p3 }
  0x6f   : > { %p2153_p10 = por %p157_p7, %p43_p13  ;;  %s1419_s13 = sshll.u32 %s229_s16, 3 }
  0x70   : > { %s2360_s23 = scalar_select %p2149_p4, 1, 0 }
  0x71   : > { %s2361_s12 = scalar_select %p2153_p10, 1, 0 }
  0x72   : > { %s1420_s14 = sshll.u32 %s1922_s21, 7  ;;  %s233_s29 = scalar_lea.vmem [#allocation2], %s1419_s13 }
  0x73   : > { %s2161_s26 = scalar_lea.hbm %s2345_s0, %s1420_s14  ;;  %s240_s30 = sshll.u32 %s233_s29, 4  ;;  %s2163_s30 = int_to_ptr.vmem [resolvable:$true] %s240_s30 }
  0x74   : > { %p2167_p11 = pnand %p1637_p9, %p2136_p0  ;;  %s230_s7 = scalar_lea.sflag [#allocation3], %s229_s16 }
  0x75   : > { %s1818_s28 = scalar_lea.hbm %s2161_s26, 128  ;;  %s1823_s13 = scalar_lea.hbm %s2345_s0, 256 }
  0x76   : > { %p1819_p12 = scmp.ne.s32.totalorder %s2161_s26, %s1818_s28  ;;  %p1820_p1 = pneg %p2167_p11 }
  0x77   : > { %p1824_p13 = scmp.lt.u32.totalorder %s2161_s26, %s2345_s0  ;;  %p1825_p0 = scmp.lt.u32.totalorder %s1823_s13, %s1818_s28 }
  0x78   : > { %p1821_p3 = pnand %p1820_p1, %p1819_p12  ;;  %p1827_p5 = scmp.lt.u32.totalorder %s1818_s28, %s2161_s26 }
  0x79   : > { %p1826_p2 = por %p1825_p0, %p1824_p13 }
  0x7a   : > { %p1822_p8 = pneg %p1821_p3 }
  0x7b   : > { %p1828_p7 = por %p1827_p5, %p1826_p2 }
  0x7d   : > { %p1829_p9 = pnand %p1828_p7, %p1822_p8 }
  0x7f   : > { %1832 = shalt.err (!%p1829_p9)
}
  0x80   : > { %s1833_s16 = scalar_lea.vmem %s2163_s30, 128  ;;  %s1930_s17 = smov [#allocation2]  }
  0x81   : > { %p1834_p12 = scmp.ne.s32.totalorder %s2163_s30, %s1833_s16  ;;  %s1838_s22 = sshll.u32 %s1930_s17, 4  ;;  %s1839_s22 = int_to_ptr.vmem [resolvable:$false] %s1838_s22 }
  0x82   : > { %s1840_s29 = scalar_lea.vmem %s1839_s22, 256  ;;  %p1841_p4 = scmp.lt.s32.totalorder %s2163_s30, %s1839_s22 }
  0x83   : > { %p1836_p3 = pnand %p1834_p12, %p1820_p1  ;;  %p1842_p13 = scmp.lt.s32.totalorder %s1840_s29, %s1833_s16 }
  0x85   : > { %p1837_p10 = pneg %p1836_p3  ;;  %p1843_p0 = por %p1842_p13, %p1841_p4 }
  0x87   : > { %p1844_p2 = pnand %p1843_p0, %p1837_p10 }
  0x89   : > { %1847 = shalt.err (!%p1844_p2)
}
  0x8a   : > { %1628 = dma.hbm_to_vmem [thread:$0]  (!%p2167_p11), %s2161_s26, 128, %s2163_s30, %s230_s7  }
  0x8b   : > { %p2363_p8 = scmp.ne.s32.totalorder %s2354_s25, 0 }
  0x8c   : > { %s2199_s28 = sand.u32 (!%p2363_p8), 1, %s1914_s19  }
  0x8d   : > { %249 = sbr.rel (%p2363_p8) target bundleno = 1689 (0x699), region = 40  ;;  %s1422_s27 = sshll.u32 (!%p2363_p8), %s2199_s28, 3 }
  0x8e   : > { %s252_s8 = scalar_lea.sflag (!%p2363_p8), [#allocation3], %s2199_s28  ;;  %s2205_s13 = scalar_lea.vmem (!%p2363_p8), [#allocation2], %s1422_s27 }
  0x94   : > { %1893 = dma.done.wait (%p2142_p6), %s252_s8, 128  }
  0x95   : > { %1895 = vsyncadd (%p2142_p6), %s252_s8, 4294967168  ;;  %p2364_p4 = scmp.eq.s32.totalorder %s1992_s24, 0 }
  0x97   : > { %1897 = dma.done.wait (%p2364_p4), [#allocation6], 1024   ;;  %p2365_p10 = pmov %p2364_p4 }
  0x98   : > { %p2366_p11 = pmov %p2364_p4 }
  0x99   : > { %1899 = vsyncadd (%p2365_p10), [#allocation6], 4294966272 }
  0x9a   : > { %1901 = dma.done.wait (%p2366_p11), [#allocation9], 1024   ;;  %p2367_p1 = pmov %p2364_p4 }
  0x9b   : > { %v1931_v0 = vmov 0.0|0.0   ;;  %vm1932_vm0 = vmmov 0   ;;  %v1933_v1 = vmov 0.0   ;;  %v299_v2 = vld [vmem:[#allocation5] sm:$0xff]  ;;  %v300_v3 = vld [vmem:[#allocation5 + $0x8] sm:$0xff]  ;;  %v301_v7 = vld [vmem:[#allocation5 + $0x10] sm:$0xff] }
  0x9c   : > { %1903 = vsyncadd (%p2367_p1), [#allocation9], 4294966272  ;;  %1568 = vmatprep.subr.bf16.mxu0 %v1931_v0  ;;  %1574 = vmatprep.subr.bf16.mxu1 %v1931_v0  ;;  %v378_v4 = vld [vmem:[#allocation7] sm:$0xff]  ;;  %v1569_v5 = vpack.c.bf16 %v300_v3, %v299_v2  ;;  %v379_v6 = vld [vmem:[#allocation7 + $0x8] sm:$0xff]  ;;  %vm303_vm1 = vcmask 261120   ;;  %vm526_vm2 = vcmask 64512  }
  0x9d   : > { %1492 = vmatprep.mubr.msk.f32.mxu0 %vm1932_vm0, %v1933_v1  ;;  %1503 = vmatprep.mubr.msk.f32.mxu1 %vm1932_vm0, %v1933_v1  ;;  %v302_v8 = vld [vmem:[#allocation5 + $0x18] sm:$0xff]  ;;  %v1575_v9 = vpack.c.bf16 %v379_v6, %v378_v4  ;;  %v380_v10 = vld [vmem:[#allocation7 + $0x10] sm:$0xff]  ;;  %v452_v15 = vld [vmem:[#allocation8] sm:$0xff]  ;;  %s1934_s25 = smov 120   ;;  %s1935_s15 = smov 112   ;;  %vm1208_vm3 = vcmask 130048  }
  0x9e   : > { %v381_v11 = vld [vmem:[#allocation7 + $0x18] sm:$0xff]  ;;  %1570 = vmatpush3.bf16.msra.mxu0 %v1569_v5  ;;  %v1572_v12 = vpack.c.bf16 %v302_v8, %v301_v7  ;;  %v453_v16 = vld [vmem:[#allocation8 + $0x8] sm:$0xff]  ;;  %v454_v17 = vld [vmem:[#allocation8 + $0x10] sm:$0xff]  ;;  %s1936_s26 = smov 104   ;;  %s1937_s30 = smov 8   ;;  %vm1210_vm4 = vcmask 195584  }
  0x9f   : > { %1576 = vmatpush3.bf16.msra.mxu1 %v1575_v9  ;;  %1571 = vmatprep.subr.bf16.mxu0 %v1931_v0  ;;  %v1578_v13 = vpack.c.bf16 %v381_v11, %v380_v10  ;;  %v298_v14 = vld [vmem:[%s2205_s13] sm:$0xff]  ;;  %v1581_v18 = vpack.c.bf16 %v453_v16, %v452_v15  ;;  %s1938_s6 = smov 16   ;;  %s1939_s7 = smov 24  }
  0xa0   : > { %1577 = vmatprep.subr.bf16.mxu1 %v1931_v0  ;;  %v455_v19 = vld [vmem:[#allocation8 + $0x18] sm:$0xff]  ;;  %s1445_s10 = sshll.u32 %s1992_s24, 7  ;;  %s297_s14 = scalar_lea.vmem [#allocation11], %s1422_s27 }
  0xa1   : > { %v1584_v20 = vpack.c.bf16 %v455_v19, %v454_v17  ;;  %s1304_s16 = sshll.u32 %s297_s14, 4  ;;  %s2300_s29 = scalar_lea.hbm %s2350_s5, %s1445_s10  ;;  %s2302_s16 = int_to_ptr.vmem [resolvable:$true] %s1304_s16 }
  0xa2   : > { %1573 = vmatpush3.bf16.msra.mxu0 %v1572_v12  ;;  %s1291_s8 = scalar_lea.sflag [#allocation4], %s2199_s28  ;;  %s1848_s13 = scalar_lea.vmem %s2302_s16, 128 }
  0xa3   : > { %1579 = vmatpush3.bf16.msra.mxu1 %v1578_v13  ;;  %1580 = vmatprep.subr.bf16.mxu0 %v1931_v0  ;;  %v1212_v13 = vld [vmem:[#allocation10] sm:$0xff]  ;;  %p1849_p6 = scmp.ne.s32.totalorder %s2302_s16, %s1848_s13  ;;  %p2368_p5 = scmp.ne.s32.totalorder %s2360_s23, 0 }
  0xa4   : > { %1517 = vmatprep.subr.mxu1 %v1933_v1  ;;  %s1940_s24 = smov [#allocation11]  }
  0xa5   : > { %1493 = vmatmul.mubr.msk.f32.vlgmr.msra.gmra.mrb[0].mxu0 %vm303_vm1, %v298_v14  ;;  %p1850_p7 = pnand %p1849_p6, %p2368_p5  ;;  %s1852_s27 = sshll.u32 %s1940_s24, 4  ;;  %s1853_s27 = int_to_ptr.vmem [resolvable:$false] %s1852_s27 }
  0xa6   : > { %1504 = vmatmul.mubr.msk.f32.vlgmr.msra.gmra.mrb[0].mxu1 %vm303_vm1, %v298_v14  ;;  %1514 = vmatprep.mubr.msk.f32.mxu0 %vm1932_vm0, %v1933_v1  ;;  %p1855_p12 = scmp.lt.s32.totalorder %s2302_s16, %s1853_s27 }
  0xa7   : > { %1519 = vmatprep.mubr.msk.f32.mxu1 %vm1932_vm0, %v1933_v1  ;;  %1582 = vmatpush3.bf16.msra.mxu0 %v1581_v18  ;;  %v1215_v18 = vld [vmem:[#allocation10 + $0x18] sm:$0xff]  ;;  %p1851_p9 = pneg %p1850_p7 }
  0xa8   : > { %1583 = vmatprep.subr.bf16.mxu0 %v1931_v0 }
  0xab   : > { %1585 = vmatpush3.bf16.msra.mxu0 %v1584_v20 }
  0xac   : > { %1537 = vmatprep.subr.mxu0 %v1933_v1 }
  0xae   : > { %1515 = vmatmul.mubr.msk.f32.vlgmr.msra.gmra.mrb[2].mxu0 %vm303_vm1, %v298_v14  ;;  %v1213_v14 = vld [vmem:[#allocation10 + $0x8] sm:$0xff] }
  0xaf   : > { %1539 = vmatprep.mubr.msk.f32.mxu0 %vm1932_vm0, %v1933_v1  ;;  %v1587_v16 = vpack.c.bf16 %v1213_v14, %v1212_v13 }
 0x178   : > { %v373_v21 = vpop.f32.mrb[0].mxu0 }
 0x179   : > { %v377_v22 = vmul.f32 0.35355338, %v373_v21  ;;  %v448_v23 = vpop.f32.mrb[0].mxu1  ;;  %v1494_v24 = vpop.f32.mrb[1].mxu0 }
 0x17a   : > { %v1505_v25 = vpop.f32.mrb[1].mxu1  ;;  %1518 = vmatpush3.xpose.msk.msra.mxu1 %vm526_vm2, %v448_v23 }
 0x17b   : > { %690 = vrot.lane.b32.xlu1 %v377_v22, %s1934_s25  ;;  %1522 = vmatprep.subr.mxu1 %v1933_v1 }
 0x17d   : > { %1520 = vmatmul.mubr.msk.f32.vlgmr.msra.gmra.mrb[2].mxu1 %vm526_vm2, %v377_v22 }
 0x17e   : > { %1524 = vmatprep.mubr.msk.f32.mxu1 %vm1932_vm0, %v1933_v1 }
 0x17f   : > { %861 = vrot.lane.b32.xlu1 %v448_v23, %s1935_s15 }
 0x181   : > { %v522_v26 = vpop.f32.mrb[2].mxu0 }
 0x182   : > { %v1516_v27 = vpop.f32.mrb[3].mxu0  ;;  %1523 = vmatpush3.msra.mxu1 %v522_v26 }
 0x183   : > { %859 = vrot.lane.b32.xlu1 %v377_v22, %s1935_s15  ;;  %1527 = vmatprep.subr.mxu1 %v1933_v1 }
 0x187   : > { %1029 = vrot.lane.b32.xlu1 %v448_v23, %s1936_s26 }
 0x18b   : > { %1027 = vrot.lane.b32.xlu1 %v377_v22, %s1936_s26 }
 0x18f   : > { %946 = vrot.lane.b32.xlu1 %v522_v26, %s1935_s15 }
 0x1ed   : > { %v691_v28 = vpop.permute.xlu1 %690 }
 0x1f1   : > { %v862_v29 = vpop.permute.xlu1 %861 }
 0x1f2   : > { %1538 = vmatpush3.xpose.msk.msra.mxu0 %vm526_vm2, %v862_v29 }
 0x1f3   : > { %1547 = vmatprep.subr.mxu0 %v1933_v1 }
 0x1f5   : > { %v860_v30 = vpop.permute.xlu1 %859 }
 0x1f6   : > { %1540 = vmatmul.mubr.msk.f32.vlgmr.msra.gmra.mrb[4].mxu0 %vm526_vm2, %v860_v30 }
 0x1f7   : > { %1549 = vmatprep.mubr.msk.f32.mxu0 %vm1932_vm0, %v1933_v1 }
 0x1f9   : > { %v1030_v31 = vpop.permute.xlu1 %1029 }
 0x1fa   : > { %1548 = vmatpush3.xpose.msk.msra.mxu0 %vm526_vm2, %v1030_v31 }
 0x1fb   : > { %1586 = vmatprep.subr.bf16.mxu0 %v1931_v0 }
 0x1fd   : > { %v1028_v32 = vpop.permute.xlu1 %1027 }
 0x1fe   : > { %1550 = vmatmul.mubr.msk.f32.vlgmr.msra.gmra.mrb[6].mxu0 %vm526_vm2, %v1028_v32 }
 0x1ff   : > { %1565 = vmatprep.mubr.msk.f32.mxu0 %vm1932_vm0, %v1933_v1  ;;  %1588 = vmatpush3.bf16.msra.mxu0 %v1587_v16 }
 0x200   : > { %1589 = vmatprep.subr.bf16.mxu0 %v1931_v0 }
 0x201   : > { %v947_v58 = vpop.permute.xlu1 %946 }
 0x250   : > { %v599_v33 = vpop.f32.mrb[2].mxu1 }
 0x251   : > { %v1521_v34 = vpop.f32.mrb[3].mxu1  ;;  %v603_v35 = vsel %vm526_vm2, %v599_v33, -inf }
 0x252   : > { %604 = vmax.xlane.f32.xlu0 %v603_v35 }
 0x268   : > { %692 = vrot.lane.b32.xlu0 %v448_v23, %s1934_s25 }
 0x2c9   : > { %v933_v36 = vpop.f32.mrb[4].mxu0 }
 0x2ca   : > { %v1541_v37 = vpop.f32.mrb[5].mxu0  ;;  %v937_v38 = vsel %vm526_vm2, %v933_v36, -inf }
 0x2cb   : > { %938 = vmax.xlane.f32.xlu0 %v937_v38 }
 0x2d1   : > { %v1101_v39 = vpop.f32.mrb[6].mxu0 }
 0x2d2   : > { %v1551_v40 = vpop.f32.mrb[7].mxu0  ;;  %v1105_v41 = vsel %vm526_vm2, %v1101_v39, -inf }
 0x2d3   : > { %1106 = vmax.xlane.f32.xlu1 %v1105_v41 }
 0x2df   : > { %v605_v42 = vpop.xlane.xlu0 %604 }
 0x2e0   : > { %v606_v43 = vsub.f32 %v599_v33, %v605_v42 }
 0x2e1   : > { %778 = vrot.lane.b32.xlu0 %v522_v26, %s1934_s25  ;;  %s1854_s25 = scalar_lea.vmem %s1853_s27, 256 }
 0x2e2   : > { %v607_v44 = vmul.f32 1.442695, %v606_v43  ;;  %p1856_p3 = scmp.lt.s32.totalorder %s1854_s25, %s1848_s13 }
 0x2e3   : > { %v693_v46 = vpop.permute.xlu0 %692 }
 0x2e4   : > { %1690 = vpow2.f32 %v607_v44  ;;  %p1857_p13 = por %p1856_p3, %p1855_p12 }
 0x2e6   : > { %p1858_p0 = pnand %p1857_p13, %p1851_p9 }
 0x2ee   : > { %v1691_v45 = vpop.eup %1690 }
 0x2ef   : > { %1525 = vmatmul.mubr.msk.f32.vlgmr.msra.gmra.mrb[4].mxu1 %vm526_vm2, %v1691_v45  ;;  %v609_v8 = vsel %vm526_vm2, %v1691_v45, 0.0 }
 0x2f0   : > { %1528 = vmatpush3.xpose.msk.msra.mxu1 %vm526_vm2, %v693_v46  ;;  %1529 = vmatprep.mubr.msk.f32.mxu1 %vm1932_vm0, %v1933_v1 }
 0x2f1   : > { %1532 = vmatprep.subr.mxu1 %v1933_v1 }
 0x2f3   : > { %1530 = vmatmul.mubr.msk.f32.vlgmr.msra.gmra.mrb[6].mxu1 %vm526_vm2, %v691_v28 }
 0x2f4   : > { %1534 = vmatprep.mubr.msk.f32.mxu1 %vm1932_vm0, %v1933_v1 }
 0x358   : > { %v939_v47 = vpop.xlane.xlu0 %938 }
 0x359   : > { %v940_v48 = vsub.f32 %v933_v36, %v939_v47 }
 0x35b   : > { %v941_v55 = vmul.f32 1.442695, %v940_v48 }
 0x35c   : > { %v779_v49 = vpop.permute.xlu0 %778 }
 0x35d   : > { %1533 = vmatpush3.msra.mxu1 %v779_v49  ;;  %1692 = vpow2.f32 %v941_v55 }
 0x35e   : > { %1542 = vmatprep.subr.mxu1 %v1933_v1 }
 0x360   : > { %v1107_v59 = vpop.xlane.xlu1 %1106 }
 0x361   : > { %v1108_v60 = vsub.f32 %v1101_v39, %v1107_v59 }
 0x363   : > { %v1109_v63 = vmul.f32 1.442695, %v1108_v60 }
 0x367   : > { %v1693_v56 = vpop.eup %1692 }
 0x368   : > { %v943_v57 = vsel %vm526_vm2, %v1693_v56, 0.0 }
 0x3c2   : > { %v2274_v50 = vpop.f32.mrb[4].mxu1 }
 0x3c3   : > { %v1526_v51 = vpop.f32.mrb[5].mxu1 }
 0x3c6   : > { %v764_v52 = vpop.f32.mrb[6].mxu1 }
 0x3c7   : > { %v1531_v53 = vpop.f32.mrb[7].mxu1  ;;  %v768_v54 = vsel %vm526_vm2, %v764_v52, -inf }
 0x3c8   : > { %769 = vmax.xlane.f32.xlu1 %v768_v54 }
 0x3d9   : > { %1114 = vrot.lane.b32.xlu1 %v522_v26, %s1936_s26 }
 0x3fd   : > { %944 = vadd.xlane.f32.xlu1 %v943_v57 }
 0x455   : > { %v770_v61 = vpop.xlane.xlu1 %769 }
 0x456   : > { %v771_v62 = vsub.f32 %v764_v52, %v770_v61 }
 0x458   : > { %v772_v2 = vmul.f32 1.442695, %v771_v62 }
 0x459   : > { %v1115_v6 = vpop.permute.xlu1 %1114 }
 0x45a   : > { %1694 = vpow2.f32 %v772_v2 }
 0x45b   : > { %1696 = vpow2.f32 %v1109_v63 }
 0x464   : > { %v1695_v3 = vpop.eup %1694 }
 0x465   : > { %1535 = vmatmul.mubr.msk.f32.vlgmr.msra.gmra.mrb[8].mxu1 %vm526_vm2, %v1695_v3  ;;  %v774_v4 = vsel %vm526_vm2, %v1695_v3, 0.0  ;;  %v1697_v5 = vpop.eup %1696 }
 0x466   : > { %1543 = vmatpush3.msra.mxu1 %v947_v58  ;;  %775 = vadd.xlane.f32.xlu0 %v774_v4  ;;  %v1111_v7 = vsel %vm526_vm2, %v1697_v5, 0.0 }
 0x467   : > { %1544 = vmatprep.mubr.msk.f32.mxu1 %vm1932_vm0, %v1933_v1  ;;  %1552 = vmatprep.subr.mxu1 %v1933_v1 }
 0x469   : > { %1545 = vmatmul.mubr.msk.f32.vlgmr.msra.gmra.mrb[10].mxu1 %vm526_vm2, %v1693_v56 }
 0x46a   : > { %1553 = vmatpush3.msra.mxu1 %v1115_v6  ;;  %1112 = vadd.xlane.f32.xlu0 %v1111_v7 }
 0x46b   : > { %1554 = vmatprep.mubr.msk.f32.mxu1 %vm1932_vm0, %v1933_v1  ;;  %v1214_v1 = vld [vmem:[#allocation10 + $0x10] sm:$0xff] }
 0x46c   : > { %v1590_v21 = vpack.c.bf16 %v1215_v18, %v1214_v1 }
 0x46d   : > { %1555 = vmatmul.mubr.msk.f32.vlgmr.msra.gmra.mrb[12].mxu1 %vm526_vm2, %v1697_v5 }
 0x46e   : > { %610 = vadd.xlane.f32.xlu0 %v609_v8  ;;  %1591 = vmatpush3.bf16.msra.mxu0 %v1590_v21 }
 0x48a   : > { %v945_v10 = vpop.xlane.xlu1 %944 }
 0x4f3   : > { %v776_v9 = vpop.xlane.xlu0 %775 }
 0x4f4   : > { %1698 = vrcp.f32 %v776_v9 }
 0x4f5   : > { %1700 = vrcp.f32 %v945_v10 }
 0x4f7   : > { %v1113_v11 = vpop.xlane.xlu0 %1112 }
 0x4f8   : > { %1702 = vrcp.f32 %v1113_v11 }
 0x4fb   : > { %v611_v37 = vpop.xlane.xlu0 %610 }
 0x4fc   : > { %1704 = vrcp.f32 %v611_v37 }
 0x4fe   : > { %v1699_v12 = vpop.eup %1698 }
 0x4ff   : > { %v855_v15 = vmul.f32 %v1699_v12, %v776_v9  ;;  %v1701_v17 = vpop.eup %1700 }
 0x500   : > { %v1023_v19 = vmul.f32 %v1701_v17, %v945_v10 }
 0x501   : > { %v856_v20 = vsub.f32 2.0, %v855_v15 }
 0x502   : > { %v1703_v22 = vpop.eup %1702  ;;  %v1024_v23 = vsub.f32 2.0, %v1023_v19 }
 0x503   : > { %v1191_v24 = vmul.f32 %v1703_v22, %v1113_v11  ;;  %v857_v25 = vmul.f32 %v1699_v12, %v856_v20 }
 0x504   : > { %v1025_v30 = vmul.f32 %v1701_v17, %v1024_v23 }
 0x505   : > { %v1192_v29 = vsub.f32 2.0, %v1191_v24 }
 0x506   : > { %v1705_v38 = vpop.eup %1704 }
 0x507   : > { %v1193_v33 = vmul.f32 %v1703_v22, %v1192_v29  ;;  %v686_v39 = vmul.f32 %v1705_v38, %v611_v37 }
 0x509   : > { %v687_v40 = vsub.f32 2.0, %v686_v39 }
 0x50b   : > { %v688_v41 = vmul.f32 %v1705_v38, %v687_v40 }
 0x50d   : > { %v689_v43 = vmul.f32 %v688_v41, %v2274_v50 }
 0x538   : > { %v850_v26 = vpop.f32.mrb[8].mxu1 }
 0x539   : > { %v858_v27 = vmul.f32 %v857_v25, %v850_v26  ;;  %v1536_v28 = vpop.f32.mrb[9].mxu1 }
 0x53b   : > { %1196 = vrot.lane.b32.xlu1 %v858_v27, %s1937_s30 }
 0x53c   : > { %v1018_v31 = vpop.f32.mrb[10].mxu1 }
 0x53d   : > { %v1026_v32 = vmul.f32 %v1025_v30, %v1018_v31  ;;  %v1546_v0 = vpop.f32.mrb[11].mxu1 }
 0x53f   : > { %1200 = vrot.lane.b32.xlu0 %v1026_v32, %s1938_s6 }
 0x540   : > { %v1186_v34 = vpop.f32.mrb[12].mxu1 }
 0x541   : > { %v1194_v35 = vmul.f32 %v1193_v33, %v1186_v34  ;;  %v1556_v36 = vpop.f32.mrb[13].mxu1 }
 0x543   : > { %1204 = vrot.lane.b32.xlu1 %v1194_v35, %s1939_s7 }
 0x5ad   : > { %v1197_v42 = vpop.permute.xlu1 %1196 }
 0x5ae   : > { %v1207_v45 = vsel %vm526_vm2, %v689_v43, %v1197_v42 }
 0x5b1   : > { %v1201_v44 = vpop.permute.xlu0 %1200 }
 0x5b2   : > { %v1209_v46 = vsel %vm1208_vm3, %v1207_v45, %v1201_v44 }
 0x5b5   : > { %v1205_v47 = vpop.permute.xlu1 %1204 }
 0x5b6   : > { %v1211_v48 = vsel %vm1210_vm4, %v1209_v46, %v1205_v47 }
 0x5b7   : > { %1566 = vmatmul.mubr.msk.f32.vlgmr.msra.gmra.mrb[8].mxu0 %vm303_vm1, %v1211_v48 }
 0x68a   : > { %v1285_v49 = vpop.f32.mrb[8].mxu0 }
 0x68b   : > { %1289 = vst.msk [vmem:[%s297_s14] sm:$0xff] %vm303_vm1, %v1285_v49  ;;  %v1567_v50 = vpop.f32.mrb[9].mxu0 }
 0x68c   : > { %1861 = shalt.err (!%p1858_p0)
}
 0x68d   : > { %s1862_s28 = scalar_lea.hbm %s2300_s29, 128  ;;  %s1866_s30 = scalar_lea.hbm %s2350_s5, 256 }
 0x68e   : > { %p1863_p2 = scmp.ne.s32.totalorder %s2300_s29, %s1862_s28  ;;  %p1867_p10 = scmp.lt.u32.totalorder %s2300_s29, %s2350_s5 }
 0x68f   : > { %p1868_p11 = scmp.lt.u32.totalorder %s1866_s30, %s1862_s28  ;;  %p1870_p6 = scmp.lt.u32.totalorder %s1862_s28, %s2300_s29 }
 0x690   : > { %p1864_p8 = pnand %p1863_p2, %p2368_p5 }
 0x691   : > { %p1869_p1 = por %p1868_p11, %p1867_p10 }
 0x692   : > { %p1865_p4 = pneg %p1864_p8 }
 0x693   : > { %p1871_p7 = por %p1870_p6, %p1869_p1 }
 0x695   : > { %p1872_p9 = pnand %p1871_p7, %p1865_p4 }
 0x697   : > { %1875 = shalt.err (!%p1872_p9)
}
 0x698   : > { %1610 = dma.vmem_to_hbm [thread:$0]  (%p2368_p5), %s2302_s16, 128, %s2300_s29, %s1291_s8  }
 0x699 PF: > { %s1316_s10 = sand.u32 1, %s1910_s18   ;;  %p2369_p12 = scmp.ne.s32.totalorder %s2361_s12, 0 }
 0x69a   : > { %p2370_p3 = scmp.ge.s32.totalorder %s1922_s21, 2  ;;  %s1317_s14 = scalar_lea.sflag [#allocation4], %s1316_s10 }
 0x69c   : > { %p1630_p13 = pnand %p2370_p3, %p2369_p12 }
 0x69e   : > { %1905 = dma.done.wait (!%p1630_p13), %s1317_s14, 128  }
 0x69f   : > { %1907 = vsyncadd (!%p1630_p13), %s1317_s14, 4294967168  ;;  %p20_p0 = scmp.ge.s32.totalorder %s2123_s11, 4   ;;  %s2371_s18 = smov %s1914_s19 }
 0x6a0   : > { %s2372_s19 = smov %s1918_s20  ;;  %s2373_s20 = smov %s2134_s9 }
 0x6a1   : > { %s2374_s21 = smov %s2123_s11  ;;  %22 = sbr.rel (!%p20_p0) target bundleno = 7 (0x7), region = 101 }
 0x6a8   :  { %1322 = vsyncpa [#allocation3], 1 }
 0x6a9   :  { %1324 = vsyncpa [#allocation3 + $0x1], 1 }
 0x6aa   :  { %1325 = vsyncpa [#allocation6], 1 }
 0x6ab   :  { %1326 = vsyncpa [#allocation9], 1 }
 0x6ac   :  { %1327 = vsyncpa [#allocation4], 1 }
 0x6ad   :  { %1329 = vsyncpa [#allocation4 + $0x1], 1 }

// kernel: tpu_custom_call.1
= control target key start
LH: loop header
LB: loop body
LE: loop exit
PB: predicated region body
PF: predicated region fallthrough
CT: control target
= control target key end

     0   :  { %10 = vsyncpa [#allocation3], 0  ;;  %s2345_s0 = inlined_call_operand.hbm [shape: f32[2,8,32], index: 0, kind: input, shape index: {}]   ;;  %s2346_s1 = inlined_call_operand.hbm [shape: f32[32,32], index: 1, kind: input, shape index: {}]   ;;  %s2347_s2 = inlined_call_operand.hbm [shape: f32[32,32], index: 2, kind: input, shape index: {}]   ;;  %s2348_s3 = inlined_call_operand.hbm [shape: f32[32,32], index: 3, kind: input, shape index: {}]   ;;  %s2349_s4 = inlined_call_operand.hbm [shape: f32[32,32], index: 4, kind: input, shape index: {}]   ;;  %s2350_s5 = inlined_call_operand.hbm [shape: f32[2,8,32], index: 5, kind: output, shape index: {}]  }
   0x1   :  { %12 = vsyncpa [#allocation3 + $0x1], 0 }
   0x2   :  { %13 = vsyncpa [#allocation6], 0 }
   0x3   :  { %14 = vsyncpa [#allocation9], 0 }
   0x4   :  { %15 = vsyncpa [#allocation4], 0 }
   0x5   :  { %17 = vsyncpa [#allocation4 + $0x1], 0  ;;  %s1971_s18 = smov 0   ;;  %s1973_s19 = smov 0  }
   0x6   :  { %s1975_s20 = smov 0   ;;  %s1977_s21 = smov 0  }
   0x7 LB: > { %s1924_s22 = smov [#allocation5]   ;;  %s1992_s24 = sadd.s32 4294967295, %s1922_s21   ;;  %s1922_s21 = sphi %s1977_s21, %s2374_s21   ;;  %s1918_s20 = sphi %s1975_s20, %s2373_s20   ;;  %s1914_s19 = sphi %s1973_s19, %s2372_s19   ;;  %s1910_s18 = sphi %s1971_s18, %s2371_s18  }
   0x8   : > { %s176_s23 = sshll.u32 %s1924_s22, 4  ;;  %p1413_p0 = scmp.ge.s32.totalorder %s1922_s21, 1  ;;  %s1997_s23 = int_to_ptr.vmem [resolvable:$true] %s176_s23 }
   0x9   : > { %p2351_p1 = scmp.eq.s32.totalorder %s1992_s24, 0  ;;  %p164_p2 = scmp.lt.s32.totalorder %s1922_s21, 3 }
   0xa   : > { %s1925_s26 = smov [#allocation8]   ;;  %s1926_s29 = smov [#allocation7]  }
   0xb   : > { %p1999_p3 = pnand %p1413_p0, %p164_p2  ;;  %s202_s27 = sshll.u32 %s1925_s26, 4  ;;  %s2012_s27 = int_to_ptr.vmem [resolvable:$true] %s202_s27 }
   0xc   : > { %s189_s30 = sshll.u32 %s1926_s29, 4  ;;  %s1706_s8 = scalar_lea.hbm %s2346_s1, 512  ;;  %s2014_s30 = int_to_ptr.vmem [resolvable:$true] %s189_s30 }
   0xd   : > { %s2354_s25 = scalar_select %p1999_p3, 1, 0 }
   0xe   : > { %p1612_p5 = pneg %p1999_p3  ;;  %p1707_p7 = scmp.ne.s32.totalorder %s2346_s1, %s1706_s8 }
   0xf   : > { %p1713_p11 = scmp.lt.u32.totalorder %s1706_s8, %s2346_s1 }
  0x10   : > { %p2008_p6 = pnand %p1612_p5, %p2351_p1 }
  0x12   : > { %p2024_p8 = pneg %p2008_p6 }
  0x14   : > { %p1709_p9 = pnand %p2024_p8, %p1707_p7 }
  0x16   : > { %p1710_p10 = pneg %p1709_p9 }
  0x18   : > { %p1715_p12 = pnand %p1713_p11, %p1710_p10 }
  0x1a   : > { %1718 = shalt.err (!%p1715_p12)
}
  0x1b   : > { %s1719_s14 = scalar_lea.vmem %s1997_s23, 512  ;;  %p1727_p5 = scmp.lt.s32.totalorder %s1997_s23, %s1997_s23 }
  0x1c   : > { %p1720_p13 = scmp.ne.s32.totalorder %s1997_s23, %s1719_s14  ;;  %p1728_p4 = scmp.lt.s32.totalorder %s1719_s14, %s1719_s14 }
  0x1e   : > { %p1722_p0 = pnand %p1720_p13, %p2024_p8  ;;  %p1729_p7 = por %p1728_p4, %p1727_p5 }
  0x20   : > { %p1723_p2 = pneg %p1722_p0 }
  0x22   : > { %p1730_p9 = pnand %p1729_p7, %p1723_p2 }
  0x24   : > { %1733 = shalt.err (!%p1730_p9)
}
  0x25   : > { %s1927_s15 = smov 128   ;;  %s1928_s16 = smov 8  }
  0x26   : > { %1615 = dma.hbm_to_vmem [thread:$0]  (!%p2008_p6), %s2346_s1, 512, %s1997_s23, [#allocation6], %s1927_s15, %s1927_s15, %s1928_s16  }
  0x27   : > { %s1734_s6 = scalar_lea.hbm %s2348_s3, 512 }
  0x28   : > { %p1735_p4 = scmp.ne.s32.totalorder %s2348_s3, %s1734_s6  ;;  %p1741_p12 = scmp.lt.u32.totalorder %s1734_s6, %s2348_s3 }
  0x2a   : > { %p1737_p10 = pnand %p1735_p4, %p2024_p8 }
  0x2c   : > { %p1738_p11 = pneg %p1737_p10 }
  0x2e   : > { %p1743_p13 = pnand %p1741_p12, %p1738_p11 }
  0x30   : > { %1746 = shalt.err (!%p1743_p13)
}
  0x31   : > { %s1747_s23 = scalar_lea.vmem %s2012_s27, 512  ;;  %p1755_p7 = scmp.lt.s32.totalorder %s2012_s27, %s2012_s27 }
  0x32   : > { %p1748_p0 = scmp.ne.s32.totalorder %s2012_s27, %s1747_s23  ;;  %p1756_p9 = scmp.lt.s32.totalorder %s1747_s23, %s1747_s23 }
  0x34   : > { %p1750_p2 = pnand %p1748_p0, %p2024_p8  ;;  %p1757_p4 = por %p1756_p9, %p1755_p7 }
  0x36   : > { %p1751_p5 = pneg %p1750_p2 }
  0x38   : > { %p1758_p10 = pnand %p1757_p4, %p1751_p5 }
  0x3a   : > { %1761 = shalt.err (!%p1758_p10)
}
  0x3b   : > { %1621 = dma.hbm_to_vmem [thread:$0]  (!%p2008_p6), %s2348_s3, 512, %s2012_s27, [#allocation9], %s1927_s15, %s1927_s15, %s1928_s16  }
  0x3c   : > { %s1762_s22 = scalar_lea.hbm %s2347_s2, 512 }
  0x3d   : > { %p1763_p11 = scmp.ne.s32.totalorder %s2347_s2, %s1762_s22  ;;  %p1769_p0 = scmp.lt.u32.totalorder %s1762_s22, %s2347_s2 }
  0x3f   : > { %p1765_p12 = pnand %p1763_p11, %p2024_p8 }
  0x41   : > { %p1766_p13 = pneg %p1765_p12 }
  0x43   : > { %p1771_p2 = pnand %p1769_p0, %p1766_p13 }
  0x45   : > { %1774 = shalt.err (!%p1771_p2)
}
  0x46   : > { %s1775_s27 = scalar_lea.vmem %s2014_s30, 512  ;;  %p1783_p4 = scmp.lt.s32.totalorder %s2014_s30, %s2014_s30 }
  0x47   : > { %p1776_p5 = scmp.ne.s32.totalorder %s2014_s30, %s1775_s27  ;;  %p1784_p10 = scmp.lt.s32.totalorder %s1775_s27, %s1775_s27 }
  0x49   : > { %p1778_p7 = pnand %p1776_p5, %p2024_p8  ;;  %p1785_p11 = por %p1784_p10, %p1783_p4 }
  0x4b   : > { %p1779_p9 = pneg %p1778_p7 }
  0x4d   : > { %p1786_p12 = pnand %p1785_p11, %p1779_p9 }
  0x4f   : > { %1789 = shalt.err (!%p1786_p12)
}
  0x50   : > { %1618 = dma.hbm_to_vmem [thread:$0]  (!%p2008_p6), %s2347_s2, 512, %s2014_s30, [#allocation6], %s1927_s15, %s1927_s15, %s1928_s16  }
  0x51   : > { %s1929_s10 = smov [#allocation10]   ;;  %s1790_s14 = scalar_lea.hbm %s2349_s4, 512 }
  0x52   : > { %s215_s23 = sshll.u32 %s1929_s10, 4  ;;  %p1791_p13 = scmp.ne.s32.totalorder %s2349_s4, %s1790_s14  ;;  %s216_s23 = int_to_ptr.vmem [resolvable:$true] %s215_s23 }
  0x53   : > { %p1797_p5 = scmp.lt.u32.totalorder %s1790_s14, %s2349_s4 }
  0x54   : > { %p1793_p0 = pnand %p1791_p13, %p2024_p8 }
  0x56   : > { %p1794_p2 = pneg %p1793_p0 }
  0x58   : > { %p1799_p7 = pnand %p1797_p5, %p1794_p2 }
  0x5a   : > { %1802 = shalt.err (!%p1799_p7)
}
  0x5b   : > { %s1803_s30 = scalar_lea.vmem %s216_s23, 512  ;;  %p1811_p11 = scmp.lt.s32.totalorder %s216_s23, %s216_s23 }
  0x5c   : > { %p1804_p9 = scmp.ne.s32.totalorder %s216_s23, %s1803_s30  ;;  %p1812_p12 = scmp.lt.s32.totalorder %s1803_s30, %s1803_s30 }
  0x5e   : > { %p1806_p4 = pnand %p1804_p9, %p2024_p8  ;;  %p1813_p1 = por %p1812_p12, %p1811_p11 }
  0x60   : > { %p1807_p10 = pneg %p1806_p4 }
  0x62   : > { %p1814_p3 = pnand %p1813_p1, %p1807_p10 }
  0x64   : > { %1817 = shalt.err (!%p1814_p3)
}
  0x65   : > { %1624 = dma.hbm_to_vmem [thread:$0]  (!%p2008_p6), %s2349_s4, 512, %s216_s23, [#allocation9], %s1927_s15, %s1927_s15, %s1928_s16  }
  0x66   : > { %s1412_s28 = sadd.s32 4294967294, %s1922_s21   ;;  %s2123_s11 = sadd.s32 1, %s1922_s21  }
  0x67   : > { %s27_s27 = ssub.s32 %s1922_s21, %s2123_s11  ;;  %s30_s8 = sadd.s32 1, %s1918_s20 }
  0x68   : > { %p28_p1 = scmp.eq.s32.totalorder %s27_s27, 0  ;;  %p37_p3 = scmp.ne.s32.totalorder %s1918_s20, %s1914_s19 }
  0x69   : > { %p38_p8 = scmp.eq.s32.totalorder %s1922_s21, 0  ;;  %p43_p13 = scmp.ne.s32.totalorder %s1914_s19, %s1910_s18 }
  0x6a   : > { %s2134_s9 = scalar_select %p28_p1, %s1918_s20, %s30_s8  }
  0x6b   : > { %p2136_p0 = por %p38_p8, %p37_p3  ;;  %p2358_p2 = scmp.eq.s32.totalorder %s1992_s24, 0 }
  0x6c   : > { %p151_p5 = scmp.eq.s32.totalorder %s1992_s24, 1  ;;  %p157_p7 = scmp.eq.s32.totalorder %s1412_s28, 1 }
  0x6d   : > { %p2142_p6 = por %p2358_p2, %p43_p13  ;;  %p1637_p9 = scmp.lt.s32.totalorder %s1922_s21, 2 }
  0x6e   : > { %s229_s16 = sand.u32 1, %s1918_s20   ;;  %p2149_p4 = por %p151_p5, %p37_p3 }
  0x6f   : > { %p2153_p10 = por %p157_p7, %p43_p13  ;;  %s1419_s13 = sshll.u32 %s229_s16, 3 }
  0x70   : > { %s2360_s23 = scalar_select %p2149_p4, 1, 0 }
  0x71   : > { %s2361_s12 = scalar_select %p2153_p10, 1, 0 }
  0x72   : > { %s1420_s14 = sshll.u32 %s1922_s21, 7  ;;  %s233_s29 = scalar_lea.vmem [#allocation2], %s1419_s13 }
  0x73   : > { %s2161_s26 = scalar_lea.hbm %s2345_s0, %s1420_s14  ;;  %s240_s30 = sshll.u32 %s233_s29, 4  ;;  %s2163_s30 = int_to_ptr.vmem [resolvable:$true] %s240_s30 }
  0x74   : > { %p2167_p11 = pnand %p1637_p9, %p2136_p0  ;;  %s230_s7 = scalar_lea.sflag [#allocation3], %s229_s16 }
  0x75   : > { %s1818_s28 = scalar_lea.hbm %s2161_s26, 128  ;;  %s1823_s13 = scalar_lea.hbm %s2345_s0, 256 }
  0x76   : > { %p1819_p12 = scmp.ne.s32.totalorder %s2161_s26, %s1818_s28  ;;  %p1820_p1 = pneg %p2167_p11 }
  0x77   : > { %p1824_p13 = scmp.lt.u32.totalorder %s2161_s26, %s2345_s0  ;;  %p1825_p0 = scmp.lt.u32.totalorder %s1823_s13, %s1818_s28 }
  0x78   : > { %p1821_p3 = pnand %p1820_p1, %p1819_p12  ;;  %p1827_p5 = scmp.lt.u32.totalorder %s1818_s28, %s2161_s26 }
  0x79   : > { %p1826_p2 = por %p1825_p0, %p1824_p13 }
  0x7a   : > { %p1822_p8 = pneg %p1821_p3 }
  0x7b   : > { %p1828_p7 = por %p1827_p5, %p1826_p2 }
  0x7d   : > { %p1829_p9 = pnand %p1828_p7, %p1822_p8 }
  0x7f   : > { %1832 = shalt.err (!%p1829_p9)
}
  0x80   : > { %s1833_s16 = scalar_lea.vmem %s2163_s30, 128  ;;  %s1930_s17 = smov [#allocation2]  }
  0x81   : > { %p1834_p12 = scmp.ne.s32.totalorder %s2163_s30, %s1833_s16  ;;  %s1838_s22 = sshll.u32 %s1930_s17, 4  ;;  %s1839_s22 = int_to_ptr.vmem [resolvable:$false] %s1838_s22 }
  0x82   : > { %s1840_s29 = scalar_lea.vmem %s1839_s22, 256  ;;  %p1841_p4 = scmp.lt.s32.totalorder %s2163_s30, %s1839_s22 }
  0x83   : > { %p1836_p3 = pnand %p1834_p12, %p1820_p1  ;;  %p1842_p13 = scmp.lt.s32.totalorder %s1840_s29, %s1833_s16 }
  0x85   : > { %p1837_p10 = pneg %p1836_p3  ;;  %p1843_p0 = por %p1842_p13, %p1841_p4 }
  0x87   : > { %p1844_p2 = pnand %p1843_p0, %p1837_p10 }
  0x89   : > { %1847 = shalt.err (!%p1844_p2)
}
  0x8a   : > { %1628 = dma.hbm_to_vmem [thread:$0]  (!%p2167_p11), %s2161_s26, 128, %s2163_s30, %s230_s7  }
  0x8b   : > { %p2363_p8 = scmp.ne.s32.totalorder %s2354_s25, 0 }
  0x8c   : > { %s2199_s28 = sand.u32 (!%p2363_p8), 1, %s1914_s19  }
  0x8d   : > { %249 = sbr.rel (%p2363_p8) target bundleno = 1689 (0x699), region = 40  ;;  %s1422_s27 = sshll.u32 (!%p2363_p8), %s2199_s28, 3 }
  0x8e   : > { %s252_s8 = scalar_lea.sflag (!%p2363_p8), [#allocation3], %s2199_s28  ;;  %s2205_s13 = scalar_lea.vmem (!%p2363_p8), [#allocation2], %s1422_s27 }
  0x94   : > { %1893 = dma.done.wait (%p2142_p6), %s252_s8, 128  }
  0x95   : > { %1895 = vsyncadd (%p2142_p6), %s252_s8, 4294967168  ;;  %p2364_p4 = scmp.eq.s32.totalorder %s1992_s24, 0 }
  0x97   : > { %1897 = dma.done.wait (%p2364_p4), [#allocation6], 1024   ;;  %p2365_p10 = pmov %p2364_p4 }
  0x98   : > { %p2366_p11 = pmov %p2364_p4 }
  0x99   : > { %1899 = vsyncadd (%p2365_p10), [#allocation6], 4294966272 }
  0x9a   : > { %1901 = dma.done.wait (%p2366_p11), [#allocation9], 1024   ;;  %p2367_p1 = pmov %p2364_p4 }
  0x9b   : > { %v1931_v0 = vmov 0.0|0.0   ;;  %vm1932_vm0 = vmmov 0   ;;  %v1933_v1 = vmov 0.0   ;;  %v299_v2 = vld [vmem:[#allocation5] sm:$0xff]  ;;  %v300_v3 = vld [vmem:[#allocation5 + $0x8] sm:$0xff]  ;;  %v301_v7 = vld [vmem:[#allocation5 + $0x10] sm:$0xff] }
  0x9c   : > { %1903 = vsyncadd (%p2367_p1), [#allocation9], 4294966272  ;;  %1568 = vmatprep.subr.bf16.mxu0 %v1931_v0  ;;  %1574 = vmatprep.subr.bf16.mxu1 %v1931_v0  ;;  %v378_v4 = vld [vmem:[#allocation7] sm:$0xff]  ;;  %v1569_v5 = vpack.c.bf16 %v300_v3, %v299_v2  ;;  %v379_v6 = vld [vmem:[#allocation7 + $0x8] sm:$0xff]  ;;  %vm303_vm1 = vcmask 261120   ;;  %vm526_vm2 = vcmask 64512  }
  0x9d   : > { %1492 = vmatprep.mubr.msk.f32.mxu0 %vm1932_vm0, %v1933_v1  ;;  %1503 = vmatprep.mubr.msk.f32.mxu1 %vm1932_vm0, %v1933_v1  ;;  %v302_v8 = vld [vmem:[#allocation5 + $0x18] sm:$0xff]  ;;  %v1575_v9 = vpack.c.bf16 %v379_v6, %v378_v4  ;;  %v380_v10 = vld [vmem:[#allocation7 + $0x10] sm:$0xff]  ;;  %v452_v15 = vld [vmem:[#allocation8] sm:$0xff]  ;;  %s1934_s25 = smov 120   ;;  %s1935_s15 = smov 112   ;;  %vm1208_vm3 = vcmask 130048  }
  0x9e   : > { %v381_v11 = vld [vmem:[#allocation7 + $0x18] sm:$0xff]  ;;  %1570 = vmatpush3.bf16.msra.mxu0 %v1569_v5  ;;  %v1572_v12 = vpack.c.bf16 %v302_v8, %v301_v7  ;;  %v453_v16 = vld [vmem:[#allocation8 + $0x8] sm:$0xff]  ;;  %v454_v17 = vld [vmem:[#allocation8 + $0x10] sm:$0xff]  ;;  %s1936_s26 = smov 104   ;;  %s1937_s30 = smov 8   ;;  %vm1210_vm4 = vcmask 195584  }
  0x9f   : > { %1576 = vmatpush3.bf16.msra.mxu1 %v1575_v9  ;;  %1571 = vmatprep.subr.bf16.mxu0 %v1931_v0  ;;  %v1578_v13 = vpack.c.bf16 %v381_v11, %v380_v10  ;;  %v298_v14 = vld [vmem:[%s2205_s13] sm:$0xff]  ;;  %v1581_v18 = vpack.c.bf16 %v453_v16, %v452_v15  ;;  %s1938_s6 = smov 16   ;;  %s1939_s7 = smov 24  }
  0xa0   : > { %1577 = vmatprep.subr.bf16.mxu1 %v1931_v0  ;;  %v455_v19 = vld [vmem:[#allocation8 + $0x18] sm:$0xff]  ;;  %s1445_s10 = sshll.u32 %s1992_s24, 7  ;;  %s297_s14 = scalar_lea.vmem [#allocation11], %s1422_s27 }
  0xa1   : > { %v1584_v20 = vpack.c.bf16 %v455_v19, %v454_v17  ;;  %s1304_s16 = sshll.u32 %s297_s14, 4  ;;  %s2300_s29 = scalar_lea.hbm %s2350_s5, %s1445_s10  ;;  %s2302_s16 = int_to_ptr.vmem [resolvable:$true] %s1304_s16 }
  0xa2   : > { %1573 = vmatpush3.bf16.msra.mxu0 %v1572_v12  ;;  %s1291_s8 = scalar_lea.sflag [#allocation4], %s2199_s28  ;;  %s1848_s13 = scalar_lea.vmem %s2302_s16, 128 }
  0xa3   : > { %1579 = vmatpush3.bf16.msra.mxu1 %v1578_v13  ;;  %1580 = vmatprep.subr.bf16.mxu0 %v1931_v0  ;;  %v1212_v13 = vld [vmem:[#allocation10] sm:$0xff]  ;;  %p1849_p6 = scmp.ne.s32.totalorder %s2302_s16, %s1848_s13  ;;  %p2368_p5 = scmp.ne.s32.totalorder %s2360_s23, 0 }
  0xa4   : > { %1517 = vmatprep.subr.mxu1 %v1933_v1  ;;  %s1940_s24 = smov [#allocation11]  }
  0xa5   : > { %1493 = vmatmul.mubr.msk.f32.vlgmr.msra.gmra.mrb[0].mxu0 %vm303_vm1, %v298_v14  ;;  %p1850_p7 = pnand %p1849_p6, %p2368_p5  ;;  %s1852_s27 = sshll.u32 %s1940_s24, 4  ;;  %s1853_s27 = int_to_ptr.vmem [resolvable:$false] %s1852_s27 }
  0xa6   : > { %1504 = vmatmul.mubr.msk.f32.vlgmr.msra.gmra.mrb[0].mxu1 %vm303_vm1, %v298_v14  ;;  %1514 = vmatprep.mubr.msk.f32.mxu0 %vm1932_vm0, %v1933_v1  ;;  %p1855_p12 = scmp.lt.s32.totalorder %s2302_s16, %s1853_s27 }
  0xa7   : > { %1519 = vmatprep.mubr.msk.f32.mxu1 %vm1932_vm0, %v1933_v1  ;;  %1582 = vmatpush3.bf16.msra.mxu0 %v1581_v18  ;;  %v1215_v18 = vld [vmem:[#allocation10 + $0x18] sm:$0xff]  ;;  %p1851_p9 = pneg %p1850_p7 }
  0xa8   : > { %1583 = vmatprep.subr.bf16.mxu0 %v1931_v0 }
  0xab   : > { %1585 = vmatpush3.bf16.msra.mxu0 %v1584_v20 }
  0xac   : > { %1537 = vmatprep.subr.mxu0 %v1933_v1 }
  0xae   : > { %1515 = vmatmul.mubr.msk.f32.vlgmr.msra.gmra.mrb[2].mxu0 %vm303_vm1, %v298_v14  ;;  %v1213_v14 = vld [vmem:[#allocation10 + $0x8] sm:$0xff] }
  0xaf   : > { %1539 = vmatprep.mubr.msk.f32.mxu0 %vm1932_vm0, %v1933_v1  ;;  %v1587_v16 = vpack.c.bf16 %v1213_v14, %v1212_v13 }
 0x178   : > { %v373_v21 = vpop.f32.mrb[0].mxu0 }
 0x179   : > { %v377_v22 = vmul.f32 0.35355338, %v373_v21  ;;  %v448_v23 = vpop.f32.mrb[0].mxu1  ;;  %v1494_v24 = vpop.f32.mrb[1].mxu0 }
 0x17a   : > { %v1505_v25 = vpop.f32.mrb[1].mxu1  ;;  %1518 = vmatpush3.xpose.msk.msra.mxu1 %vm526_vm2, %v448_v23 }
 0x17b   : > { %690 = vrot.lane.b32.xlu1 %v377_v22, %s1934_s25  ;;  %1522 = vmatprep.subr.mxu1 %v1933_v1 }
 0x17d   : > { %1520 = vmatmul.mubr.msk.f32.vlgmr.msra.gmra.mrb[2].mxu1 %vm526_vm2, %v377_v22 }
 0x17e   : > { %1524 = vmatprep.mubr.msk.f32.mxu1 %vm1932_vm0, %v1933_v1 }
 0x17f   : > { %861 = vrot.lane.b32.xlu1 %v448_v23, %s1935_s15 }
 0x181   : > { %v522_v26 = vpop.f32.mrb[2].mxu0 }
 0x182   : > { %v1516_v27 = vpop.f32.mrb[3].mxu0  ;;  %1523 = vmatpush3.msra.mxu1 %v522_v26 }
 0x183   : > { %859 = vrot.lane.b32.xlu1 %v377_v22, %s1935_s15  ;;  %1527 = vmatprep.subr.mxu1 %v1933_v1 }
 0x187   : > { %1029 = vrot.lane.b32.xlu1 %v448_v23, %s1936_s26 }
 0x18b   : > { %1027 = vrot.lane.b32.xlu1 %v377_v22, %s1936_s26 }
 0x18f   : > { %946 = vrot.lane.b32.xlu1 %v522_v26, %s1935_s15 }
 0x1ed   : > { %v691_v28 = vpop.permute.xlu1 %690 }
 0x1f1   : > { %v862_v29 = vpop.permute.xlu1 %861 }
 0x1f2   : > { %1538 = vmatpush3.xpose.msk.msra.mxu0 %vm526_vm2, %v862_v29 }
 0x1f3   : > { %1547 = vmatprep.subr.mxu0 %v1933_v1 }
 0x1f5   : > { %v860_v30 = vpop.permute.xlu1 %859 }
 0x1f6   : > { %1540 = vmatmul.mubr.msk.f32.vlgmr.msra.gmra.mrb[4].mxu0 %vm526_vm2, %v860_v30 }
 0x1f7   : > { %1549 = vmatprep.mubr.msk.f32.mxu0 %vm1932_vm0, %v1933_v1 }
 0x1f9   : > { %v1030_v31 = vpop.permute.xlu1 %1029 }
 0x1fa   : > { %1548 = vmatpush3.xpose.msk.msra.mxu0 %vm526_vm2, %v1030_v31 }
 0x1fb   : > { %1586 = vmatprep.subr.bf16.mxu0 %v1931_v0 }
 0x1fd   : > { %v1028_v32 = vpop.permute.xlu1 %1027 }
 0x1fe   : > { %1550 = vmatmul.mubr.msk.f32.vlgmr.msra.gmra.mrb[6].mxu0 %vm526_vm2, %v1028_v32 }
 0x1ff   : > { %1565 = vmatprep.mubr.msk.f32.mxu0 %vm1932_vm0, %v1933_v1  ;;  %1588 = vmatpush3.bf16.msra.mxu0 %v1587_v16 }
 0x200   : > { %1589 = vmatprep.subr.bf16.mxu0 %v1931_v0 }
 0x201   : > { %v947_v58 = vpop.permute.xlu1 %946 }
 0x250   : > { %v599_v33 = vpop.f32.mrb[2].mxu1 }
 0x251   : > { %v1521_v34 = vpop.f32.mrb[3].mxu1  ;;  %v603_v35 = vsel %vm526_vm2, %v599_v33, -inf }
 0x252   : > { %604 = vmax.xlane.f32.xlu0 %v603_v35 }
 0x268   : > { %692 = vrot.lane.b32.xlu0 %v448_v23, %s1934_s25 }
 0x2c9   : > { %v933_v36 = vpop.f32.mrb[4].mxu0 }
 0x2ca   : > { %v1541_v37 = vpop.f32.mrb[5].mxu0  ;;  %v937_v38 = vsel %vm526_vm2, %v933_v36, -inf }
 0x2cb   : > { %938 = vmax.xlane.f32.xlu0 %v937_v38 }
 0x2d1   : > { %v1101_v39 = vpop.f32.mrb[6].mxu0 }
 0x2d2   : > { %v1551_v40 = vpop.f32.mrb[7].mxu0  ;;  %v1105_v41 = vsel %vm526_vm2, %v1101_v39, -inf }
 0x2d3   : > { %1106 = vmax.xlane.f32.xlu1 %v1105_v41 }
 0x2df   : > { %v605_v42 = vpop.xlane.xlu0 %604 }
 0x2e0   : > { %v606_v43 = vsub.f32 %v599_v33, %v605_v42 }
 0x2e1   : > { %778 = vrot.lane.b32.xlu0 %v522_v26, %s1934_s25  ;;  %s1854_s25 = scalar_lea.vmem %s1853_s27, 256 }
 0x2e2   : > { %v607_v44 = vmul.f32 1.442695, %v606_v43  ;;  %p1856_p3 = scmp.lt.s32.totalorder %s1854_s25, %s1848_s13 }
 0x2e3   : > { %v693_v46 = vpop.permute.xlu0 %692 }
 0x2e4   : > { %1690 = vpow2.f32 %v607_v44  ;;  %p1857_p13 = por %p1856_p3, %p1855_p12 }
 0x2e6   : > { %p1858_p0 = pnand %p1857_p13, %p1851_p9 }
 0x2ee   : > { %v1691_v45 = vpop.eup %1690 }
 0x2ef   : > { %1525 = vmatmul.mubr.msk.f32.vlgmr.msra.gmra.mrb[4].mxu1 %vm526_vm2, %v1691_v45  ;;  %v609_v8 = vsel %vm526_vm2, %v1691_v45, 0.0 }
 0x2f0   : > { %1528 = vmatpush3.xpose.msk.msra.mxu1 %vm526_vm2, %v693_v46  ;;  %1529 = vmatprep.mubr.msk.f32.mxu1 %vm1932_vm0, %v1933_v1 }
 0x2f1   : > { %1532 = vmatprep.subr.mxu1 %v1933_v1 }
 0x2f3   : > { %1530 = vmatmul.mubr.msk.f32.vlgmr.msra.gmra.mrb[6].mxu1 %vm526_vm2, %v691_v28 }
 0x2f4   : > { %1534 = vmatprep.mubr.msk.f32.mxu1 %vm1932_vm0, %v1933_v1 }
 0x358   : > { %v939_v47 = vpop.xlane.xlu0 %938 }
 0x359   : > { %v940_v48 = vsub.f32 %v933_v36, %v939_v47 }
 0x35b   : > { %v941_v55 = vmul.f32 1.442695, %v940_v48 }
 0x35c   : > { %v779_v49 = vpop.permute.xlu0 %778 }
 0x35d   : > { %1533 = vmatpush3.msra.mxu1 %v779_v49  ;;  %1692 = vpow2.f32 %v941_v55 }
 0x35e   : > { %1542 = vmatprep.subr.mxu1 %v1933_v1 }
 0x360   : > { %v1107_v59 = vpop.xlane.xlu1 %1106 }
 0x361   : > { %v1108_v60 = vsub.f32 %v1101_v39, %v1107_v59 }
 0x363   : > { %v1109_v63 = vmul.f32 1.442695, %v1108_v60 }
 0x367   : > { %v1693_v56 = vpop.eup %1692 }
 0x368   : > { %v943_v57 = vsel %vm526_vm2, %v1693_v56, 0.0 }
 0x3c2   : > { %v2274_v50 = vpop.f32.mrb[4].mxu1 }
 0x3c3   : > { %v1526_v51 = vpop.f32.mrb[5].mxu1 }
 0x3c6   : > { %v764_v52 = vpop.f32.mrb[6].mxu1 }
 0x3c7   : > { %v1531_v53 = vpop.f32.mrb[7].mxu1  ;;  %v768_v54 = vsel %vm526_vm2, %v764_v52, -inf }
 0x3c8   : > { %769 = vmax.xlane.f32.xlu1 %v768_v54 }
 0x3d9   : > { %1114 = vrot.lane.b32.xlu1 %v522_v26, %s1936_s26 }
 0x3fd   : > { %944 = vadd.xlane.f32.xlu1 %v943_v57 }
 0x455   : > { %v770_v61 = vpop.xlane.xlu1 %769 }
 0x456   : > { %v771_v62 = vsub.f32 %v764_v52, %v770_v61 }
 0x458   : > { %v772_v2 = vmul.f32 1.442695, %v771_v62 }
 0x459   : > { %v1115_v6 = vpop.permute.xlu1 %1114 }
 0x45a   : > { %1694 = vpow2.f32 %v772_v2 }
 0x45b   : > { %1696 = vpow2.f32 %v1109_v63 }
 0x464   : > { %v1695_v3 = vpop.eup %1694 }
 0x465   : > { %1535 = vmatmul.mubr.msk.f32.vlgmr.msra.gmra.mrb[8].mxu1 %vm526_vm2, %v1695_v3  ;;  %v774_v4 = vsel %vm526_vm2, %v1695_v3, 0.0  ;;  %v1697_v5 = vpop.eup %1696 }
 0x466   : > { %1543 = vmatpush3.msra.mxu1 %v947_v58  ;;  %775 = vadd.xlane.f32.xlu0 %v774_v4  ;;  %v1111_v7 = vsel %vm526_vm2, %v1697_v5, 0.0 }
 0x467   : > { %1544 = vmatprep.mubr.msk.f32.mxu1 %vm1932_vm0, %v1933_v1  ;;  %1552 = vmatprep.subr.mxu1 %v1933_v1 }
 0x469   : > { %1545 = vmatmul.mubr.msk.f32.vlgmr.msra.gmra.mrb[10].mxu1 %vm526_vm2, %v1693_v56 }
 0x46a   : > { %1553 = vmatpush3.msra.mxu1 %v1115_v6  ;;  %1112 = vadd.xlane.f32.xlu0 %v1111_v7 }
 0x46b   : > { %1554 = vmatprep.mubr.msk.f32.mxu1 %vm1932_vm0, %v1933_v1  ;;  %v1214_v1 = vld [vmem:[#allocation10 + $0x10] sm:$0xff] }
 0x46c   : > { %v1590_v21 = vpack.c.bf16 %v1215_v18, %v1214_v1 }
 0x46d   : > { %1555 = vmatmul.mubr.msk.f32.vlgmr.msra.gmra.mrb[12].mxu1 %vm526_vm2, %v1697_v5 }
 0x46e   : > { %610 = vadd.xlane.f32.xlu0 %v609_v8  ;;  %1591 = vmatpush3.bf16.msra.mxu0 %v1590_v21 }
 0x48a   : > { %v945_v10 = vpop.xlane.xlu1 %944 }
 0x4f3   : > { %v776_v9 = vpop.xlane.xlu0 %775 }
 0x4f4   : > { %1698 = vrcp.f32 %v776_v9 }
 0x4f5   : > { %1700 = vrcp.f32 %v945_v10 }
 0x4f7   : > { %v1113_v11 = vpop.xlane.xlu0 %1112 }
 0x4f8   : > { %1702 = vrcp.f32 %v1113_v11 }
 0x4fb   : > { %v611_v37 = vpop.xlane.xlu0 %610 }
 0x4fc   : > { %1704 = vrcp.f32 %v611_v37 }
 0x4fe   : > { %v1699_v12 = vpop.eup %1698 }
 0x4ff   : > { %v855_v15 = vmul.f32 %v1699_v12, %v776_v9  ;;  %v1701_v17 = vpop.eup %1700 }
 0x500   : > { %v1023_v19 = vmul.f32 %v1701_v17, %v945_v10 }
 0x501   : > { %v856_v20 = vsub.f32 2.0, %v855_v15 }
 0x502   : > { %v1703_v22 = vpop.eup %1702  ;;  %v1024_v23 = vsub.f32 2.0, %v1023_v19 }
 0x503   : > { %v1191_v24 = vmul.f32 %v1703_v22, %v1113_v11  ;;  %v857_v25 = vmul.f32 %v1699_v12, %v856_v20 }
 0x504   : > { %v1025_v30 = vmul.f32 %v1701_v17, %v1024_v23 }
 0x505   : > { %v1192_v29 = vsub.f32 2.0, %v1191_v24 }
 0x506   : > { %v1705_v38 = vpop.eup %1704 }
 0x507   : > { %v1193_v33 = vmul.f32 %v1703_v22, %v1192_v29  ;;  %v686_v39 = vmul.f32 %v1705_v38, %v611_v37 }
 0x509   : > { %v687_v40 = vsub.f32 2.0, %v686_v39 }
 0x50b   : > { %v688_v41 = vmul.f32 %v1705_v38, %v687_v40 }
 0x50d   : > { %v689_v43 = vmul.f32 %v688_v41, %v2274_v50 }
 0x538   : > { %v850_v26 = vpop.f32.mrb[8].mxu1 }
 0x539   : > { %v858_v27 = vmul.f32 %v857_v25, %v850_v26  ;;  %v1536_v28 = vpop.f32.mrb[9].mxu1 }
 0x53b   : > { %1196 = vrot.lane.b32.xlu1 %v858_v27, %s1937_s30 }
 0x53c   : > { %v1018_v31 = vpop.f32.mrb[10].mxu1 }
 0x53d   : > { %v1026_v32 = vmul.f32 %v1025_v30, %v1018_v31  ;;  %v1546_v0 = vpop.f32.mrb[11].mxu1 }
 0x53f   : > { %1200 = vrot.lane.b32.xlu0 %v1026_v32, %s1938_s6 }
 0x540   : > { %v1186_v34 = vpop.f32.mrb[12].mxu1 }
 0x541   : > { %v1194_v35 = vmul.f32 %v1193_v33, %v1186_v34  ;;  %v1556_v36 = vpop.f32.mrb[13].mxu1 }
 0x543   : > { %1204 = vrot.lane.b32.xlu1 %v1194_v35, %s1939_s7 }
 0x5ad   : > { %v1197_v42 = vpop.permute.xlu1 %1196 }
 0x5ae   : > { %v1207_v45 = vsel %vm526_vm2, %v689_v43, %v1197_v42 }
 0x5b1   : > { %v1201_v44 = vpop.permute.xlu0 %1200 }
 0x5b2   : > { %v1209_v46 = vsel %vm1208_vm3, %v1207_v45, %v1201_v44 }
 0x5b5   : > { %v1205_v47 = vpop.permute.xlu1 %1204 }
 0x5b6   : > { %v1211_v48 = vsel %vm1210_vm4, %v1209_v46, %v1205_v47 }
 0x5b7   : > { %1566 = vmatmul.mubr.msk.f32.vlgmr.msra.gmra.mrb[8].mxu0 %vm303_vm1, %v1211_v48 }
 0x68a   : > { %v1285_v49 = vpop.f32.mrb[8].mxu0 }
 0x68b   : > { %1289 = vst.msk [vmem:[%s297_s14] sm:$0xff] %vm303_vm1, %v1285_v49  ;;  %v1567_v50 = vpop.f32.mrb[9].mxu0 }
 0x68c   : > { %1861 = shalt.err (!%p1858_p0)
}
 0x68d   : > { %s1862_s28 = scalar_lea.hbm %s2300_s29, 128  ;;  %s1866_s30 = scalar_lea.hbm %s2350_s5, 256 }
 0x68e   : > { %p1863_p2 = scmp.ne.s32.totalorder %s2300_s29, %s1862_s28  ;;  %p1867_p10 = scmp.lt.u32.totalorder %s2300_s29, %s2350_s5 }
 0x68f   : > { %p1868_p11 = scmp.lt.u32.totalorder %s1866_s30, %s1862_s28  ;;  %p1870_p6 = scmp.lt.u32.totalorder %s1862_s28, %s2300_s29 }
 0x690   : > { %p1864_p8 = pnand %p1863_p2, %p2368_p5 }
 0x691   : > { %p1869_p1 = por %p1868_p11, %p1867_p10 }
 0x692   : > { %p1865_p4 = pneg %p1864_p8 }
 0x693   : > { %p1871_p7 = por %p1870_p6, %p1869_p1 }
 0x695   : > { %p1872_p9 = pnand %p1871_p7, %p1865_p4 }
 0x697   : > { %1875 = shalt.err (!%p1872_p9)
}
 0x698   : > { %1610 = dma.vmem_to_hbm [thread:$0]  (%p2368_p5), %s2302_s16, 128, %s2300_s29, %s1291_s8  }
 0x699 PF: > { %s1316_s10 = sand.u32 1, %s1910_s18   ;;  %p2369_p12 = scmp.ne.s32.totalorder %s2361_s12, 0 }
 0x69a   : > { %p2370_p3 = scmp.ge.s32.totalorder %s1922_s21, 2  ;;  %s1317_s14 = scalar_lea.sflag [#allocation4], %s1316_s10 }
 0x69c   : > { %p1630_p13 = pnand %p2370_p3, %p2369_p12 }
 0x69e   : > { %1905 = dma.done.wait (!%p1630_p13), %s1317_s14, 128  }
 0x69f   : > { %1907 = vsyncadd (!%p1630_p13), %s1317_s14, 4294967168  ;;  %p20_p0 = scmp.ge.s32.totalorder %s2123_s11, 4   ;;  %s2371_s18 = smov %s1914_s19 }
 0x6a0   : > { %s2372_s19 = smov %s1918_s20  ;;  %s2373_s20 = smov %s2134_s9 }
 0x6a1   : > { %s2374_s21 = smov %s2123_s11  ;;  %22 = sbr.rel (!%p20_p0) target bundleno = 7 (0x7), region = 101 }
 0x6a8   :  { %1322 = vsyncpa [#allocation3], 1 }
 0x6a9   :  { %1324 = vsyncpa [#allocation3 + $0x1], 1 }
 0x6aa   :  { %1325 = vsyncpa [#allocation6], 1 }
 0x6ab   :  { %1326 = vsyncpa [#allocation9], 1 }
 0x6ac   :  { %1327 = vsyncpa [#allocation4], 1 }
 0x6ad   :  { %1329 = vsyncpa [#allocation4 + $0x1], 1 }

</bundles_post_ra>
